<compile_context>
chip_gen: v5e
topology: v5e:2x2
jax: 0.10.0
libtpu: 0.0.40
codegen_flags: <defaults>
</compile_context>

<pallas_src>
import jax
import jax.numpy as jnp
from jax.experimental import pallas as pl
from jax.experimental.pallas import tpu as pltpu

INPUT_DIM = 459
H1, H2, H3 = 512, 256, 128
OUTPUT_DIM = 1
BN_EPS = 1e-5


def _round_up(n, m):
    return ((n + m - 1) // m) * m


def mlp_kernel(x_ref, w1_ref, b1_ref, w2_ref, b2_ref, w3_ref, b3_ref,
               w4_ref, b4_ref, o_ref):
    # In-kernel cast of the raw f32 input tile to bf16 (single HBM read of x).
    x = x_ref[...].astype(jnp.bfloat16)                       # (TB, 459)

    # Layer 1: bf16 MXU matmul, f32 accumulate, f32 bias-add, bf16 ReLU epilogue.
    h = jnp.dot(x, w1_ref[...], preferred_element_type=jnp.float32) + b1_ref[...]
    h = jnp.maximum(h.astype(jnp.bfloat16), 0)                # (TB, 512) bf16
    # Layer 2
    h = jnp.dot(h, w2_ref[...], preferred_element_type=jnp.float32) + b2_ref[...]
    h = jnp.maximum(h.astype(jnp.bfloat16), 0)                # (TB, 256) bf16
    # Layer 3
    h = jnp.dot(h, w3_ref[...], preferred_element_type=jnp.float32) + b3_ref[...]
    h = jnp.maximum(h.astype(jnp.bfloat16), 0)                # (TB, 128) bf16

    # Output head 128 -> 1, lane-dense: (1,128) x (TB,128)^T -> (1, TB) row.
    out = jax.lax.dot_general(
        w4_ref[...], h,
        dimension_numbers=(((1,), (1,)), ((), ())),
        preferred_element_type=jnp.float32) + b4_ref[...]     # (1, TB) f32
    o_ref[...] = out.reshape(o_ref.shape)


def init_params(key):
    """Deterministic init mimicking PyTorch defaults (uniform +-1/sqrt(in))."""
    dims = [INPUT_DIM, H1, H2, H3, OUTPUT_DIM]
    params = []
    for li in range(len(dims) - 1):
        in_d, out_d = dims[li], dims[li + 1]
        key, kw, kb = jax.random.split(key, 3)
        bound = 1.0 / jnp.sqrt(jnp.float32(in_d))
        w = jax.random.uniform(kw, (in_d, out_d), jnp.float32, -bound, bound)
        b = jax.random.uniform(kb, (1, out_d), jnp.float32, -bound, bound)
        params.append((w, b))

    # BatchNorm1d (eval mode): gamma=1, beta=0, running_mean=0, running_var=1.
    bn = []
    for h_dim in (H1, H2, H3):
        gamma = jnp.ones((1, h_dim), jnp.float32)
        beta = jnp.zeros((1, h_dim), jnp.float32)
        r_mean = jnp.zeros((1, h_dim), jnp.float32)
        r_var = jnp.ones((1, h_dim), jnp.float32)
        scale = gamma * jax.lax.rsqrt(r_var + BN_EPS)
        shift = beta - r_mean * scale
        bn.append((scale, shift))
    return params, bn


def fold_params(params, bn):
    """Fold eval-mode BN into the Linears; cast matmul weights to bf16."""
    (w1, b1), (w2, b2), (w3, b3), (w4, b4) = params
    (s1, t1), (s2, t2), (s3, t3) = bn

    w1f, b1f = w1 * s1, b1 * s1 + t1
    w2f, b2f = w2 * s2, b2 * s2 + t2
    w3f, b3f = w3 * s3, b3 * s3 + t3

    return {
        "w1": w1f.astype(jnp.bfloat16), "b1": b1f.astype(jnp.float32),  # (459,512)
        "w2": w2f.astype(jnp.bfloat16), "b2": b2f.astype(jnp.float32),  # (512,256)
        "w3": w3f.astype(jnp.bfloat16), "b3": b3f.astype(jnp.float32),  # (256,128)
        "w4": w4.T.astype(jnp.bfloat16),                                # (1,128)
        "b4": b4.astype(jnp.float32),                                   # (1,1)
    }


def _select_tb(B, tb_max=1024):
    """Pick the batch tile: big enough to amortize the ~0.35us/step grid overhead,
    a multiple of 256 for large batches, and >= 2 grid steps once the batch is large
    enough so the "parallel" axis actually uses both v7x TensorCores."""
    b8 = _round_up(B, 8)
    if b8 <= 256:
        return b8                                    # tiny batch: one small tile
    half = _round_up(pl.cdiv(b8, 2), 256)            # >= 2 tiles, multiple of 256
    return int(min(_round_up(tb_max, 256), half))


def face_classifier_forward(x, fp, tb=None):
    B = x.shape[0]
    if tb is not None:                                # explicit override (tests)
        TB = _round_up(min(int(tb), _round_up(B, 8)), 8)
    else:
        TB = _select_tb(B)
    B_pad = _round_up(B, TB)
    num_tiles = B_pad // TB

    xp = x if B_pad == B else jnp.pad(x, ((0, B_pad - B), (0, 0)))

    flops = 2 * B_pad * (INPUT_DIM * H1 + H1 * H2 + H2 * H3 + H3)
    weight_bytes = (INPUT_DIM * H1 + H1 * H2 + H2 * H3 + H3) * 2 \
                   + (H1 + H2 + H3 + 1) * 4
    bytes_accessed = B_pad * INPUT_DIM * 4 + weight_bytes + B_pad * 4

    const = lambda shape: pl.BlockSpec(shape, lambda i: (0, 0))   # resident weights

    out = pl.pallas_call(
        mlp_kernel,
        out_shape=jax.ShapeDtypeStruct((num_tiles, 1, TB), jnp.float32),
        grid=(num_tiles,),
        in_specs=[
            pl.BlockSpec((TB, INPUT_DIM), lambda i: (i, 0)),   # raw f32 x tile
            const((INPUT_DIM, H1)), const((1, H1)),
            const((H1, H2)), const((1, H2)),
            const((H2, H3)), const((1, H3)),
            const((1, H3)), const((1, 1)),
        ],
        out_specs=pl.BlockSpec((1, 1, TB), lambda i: (i, 0, 0)),
        compiler_params=pltpu.CompilerParams(dimension_semantics=("parallel",)),
        cost_estimate=pl.CostEstimate(flops=flops, transcendentals=0,
                                      bytes_accessed=bytes_accessed),
    )(xp, fp["w1"], fp["b1"], fp["w2"], fp["b2"], fp["w3"], fp["b3"],
      fp["w4"], fp["b4"])

    return out.reshape(B_pad, 1)[:B]


def reference_forward(x, fp):
    """Pure-JAX reference mirroring the kernel math (bf16 operands, f32 accum)."""
    h = x.astype(jnp.bfloat16)
    h = jnp.dot(h, fp["w1"], preferred_element_type=jnp.float32) + fp["b1"]
    h = jnp.maximum(h.astype(jnp.bfloat16), 0)
    h = jnp.dot(h, fp["w2"], preferred_element_type=jnp.float32) + fp["b2"]
    h = jnp.maximum(h.astype(jnp.bfloat16), 0)
    h = jnp.dot(h, fp["w3"], preferred_element_type=jnp.float32) + fp["b3"]
    h = jnp.maximum(h.astype(jnp.bfloat16), 0)
    return jnp.dot(h, fp["w4"].T, preferred_element_type=jnp.float32) + fp["b4"]


if __name__ == "__main__":
    key = jax.random.PRNGKey(0)
    key, kx = jax.random.split(key)

    B = 8
    x = jax.random.normal(kx, (B, INPUT_DIM), jnp.float32)

    params, bn = init_params(key)
    fp = fold_params(params, bn)

    out = jax.block_until_ready(face_classifier_forward(x, fp))
    ref = reference_forward(x, fp)
    assert out.shape == (B, OUTPUT_DIM), out.shape
    assert jnp.allclose(out, ref, atol=1e-2, rtol=1e-2), (out, ref)

    # Exercise the multi-tile grid + batch-padding path with a ragged batch.
    key, kx2 = jax.random.split(key)
    x2 = jax.random.normal(kx2, (40, INPUT_DIM), jnp.float32)
    out2 = jax.block_until_ready(face_classifier_forward(x2, fp, tb=16))
    ref2 = reference_forward(x2, fp)
    assert out2.shape == (40, OUTPUT_DIM), out2.shape
    assert jnp.allclose(out2, ref2, atol=1e-2, rtol=1e-2), (out2, ref2)

    print("KERNEL_OK")
</pallas_src>

<mosaic_0001>
module attributes {stable_mosaic.version = 11 : i64} {
  func.func @mlp_kernel(%arg0: i32, %arg1: memref<8x459xf32, #tpu.memory_space<vmem>>, %arg2: memref<459x512xbf16, #tpu.memory_space<vmem>>, %arg3: memref<1x512xf32, #tpu.memory_space<vmem>>, %arg4: memref<512x256xbf16, #tpu.memory_space<vmem>>, %arg5: memref<1x256xf32, #tpu.memory_space<vmem>>, %arg6: memref<256x128xbf16, #tpu.memory_space<vmem>>, %arg7: memref<1x128xf32, #tpu.memory_space<vmem>>, %arg8: memref<1x128xbf16, #tpu.memory_space<vmem>>, %arg9: memref<1x1xf32, #tpu.memory_space<vmem>>, %arg10: memref<1x1x8xf32, #tpu.memory_space<vmem>>) attributes {dimension_semantics = [#tpu.dimension_semantics<parallel>], iteration_bounds = array<i64: 1>, scalar_prefetch = 0 : i64, scratch_operands = 0 : i64, tpu.core_type = #tpu.core_type<tc>, window_params = [{transform_indices = @transform_0, window_bounds = array<i64: 8, 459>}, {pipeline_mode = #tpu.pipeline_mode<synchronous>, transform_indices = @transform_1, window_bounds = array<i64: 459, 512>}, {pipeline_mode = #tpu.pipeline_mode<synchronous>, transform_indices = @transform_2, window_bounds = array<i64: 1, 512>}, {pipeline_mode = #tpu.pipeline_mode<synchronous>, transform_indices = @transform_3, window_bounds = array<i64: 512, 256>}, {pipeline_mode = #tpu.pipeline_mode<synchronous>, transform_indices = @transform_4, window_bounds = array<i64: 1, 256>}, {pipeline_mode = #tpu.pipeline_mode<synchronous>, transform_indices = @transform_5, window_bounds = array<i64: 256, 128>}, {pipeline_mode = #tpu.pipeline_mode<synchronous>, transform_indices = @transform_6, window_bounds = array<i64: 1, 128>}, {pipeline_mode = #tpu.pipeline_mode<synchronous>, transform_indices = @transform_7, window_bounds = array<i64: 1, 128>}, {pipeline_mode = #tpu.pipeline_mode<synchronous>, transform_indices = @transform_8, window_bounds = array<i64: 1, 1>}, {transform_indices = @transform_9, window_bounds = array<i64: 1, 1, 8>}]} {
    %c0 = arith.constant 0 : index
    %c0_0 = arith.constant 0 : index
    %0 = vector.load %arg1[%c0, %c0_0] : memref<8x459xf32, #tpu.memory_space<vmem>>, vector<8x459xf32>
    %1 = arith.truncf %0 : vector<8x459xf32> to vector<8x459xbf16>
    %c0_1 = arith.constant 0 : index
    %c0_2 = arith.constant 0 : index
    %2 = vector.load %arg2[%c0_1, %c0_2] : memref<459x512xbf16, #tpu.memory_space<vmem>>, vector<459x512xbf16>
    %cst = arith.constant dense<0.000000e+00> : vector<8x512xf32>
    %3 = tpu.matmul %1, %2, %cst {dimension_numbers = #tpu.dot_dimension_numbers<[1], [0], [0], [1], [0, 0, 1, 1], [], []>} : vector<8x459xbf16>, vector<459x512xbf16>, vector<8x512xf32> -> vector<8x512xf32>
    %c0_3 = arith.constant 0 : index
    %c0_4 = arith.constant 0 : index
    %4 = vector.load %arg3[%c0_3, %c0_4] : memref<1x512xf32, #tpu.memory_space<vmem>>, vector<1x512xf32>
    %5 = vector.broadcast %4 : vector<1x512xf32> to vector<8x512xf32>
    %6 = arith.addf %3, %5 : vector<8x512xf32>
    %7 = arith.truncf %6 : vector<8x512xf32> to vector<8x512xbf16>
    %cst_5 = arith.constant 0.000000e+00 : bf16
    %8 = vector.broadcast %cst_5 : bf16 to vector<8x512xbf16>
    %9 = arith.maximumf %7, %8 : vector<8x512xbf16>
    %c0_6 = arith.constant 0 : index
    %c0_7 = arith.constant 0 : index
    %10 = vector.load %arg4[%c0_6, %c0_7] : memref<512x256xbf16, #tpu.memory_space<vmem>>, vector<512x256xbf16>
    %cst_8 = arith.constant dense<0.000000e+00> : vector<8x256xf32>
    %11 = tpu.matmul %9, %10, %cst_8 {dimension_numbers = #tpu.dot_dimension_numbers<[1], [0], [0], [1], [0, 0, 1, 1], [], []>} : vector<8x512xbf16>, vector<512x256xbf16>, vector<8x256xf32> -> vector<8x256xf32>
    %c0_9 = arith.constant 0 : index
    %c0_10 = arith.constant 0 : index
    %12 = vector.load %arg5[%c0_9, %c0_10] : memref<1x256xf32, #tpu.memory_space<vmem>>, vector<1x256xf32>
    %13 = vector.broadcast %12 : vector<1x256xf32> to vector<8x256xf32>
    %14 = arith.addf %11, %13 : vector<8x256xf32>
    %15 = arith.truncf %14 : vector<8x256xf32> to vector<8x256xbf16>
    %cst_11 = arith.constant 0.000000e+00 : bf16
    %16 = vector.broadcast %cst_11 : bf16 to vector<8x256xbf16>
    %17 = arith.maximumf %15, %16 : vector<8x256xbf16>
    %c0_12 = arith.constant 0 : index
    %c0_13 = arith.constant 0 : index
    %18 = vector.load %arg6[%c0_12, %c0_13] : memref<256x128xbf16, #tpu.memory_space<vmem>>, vector<256x128xbf16>
    %cst_14 = arith.constant dense<0.000000e+00> : vector<8x128xf32>
    %19 = tpu.matmul %17, %18, %cst_14 {dimension_numbers = #tpu.dot_dimension_numbers<[1], [0], [0], [1], [0, 0, 1, 1], [], []>} : vector<8x256xbf16>, vector<256x128xbf16>, vector<8x128xf32> -> vector<8x128xf32>
    %c0_15 = arith.constant 0 : index
    %c0_16 = arith.constant 0 : index
    %20 = vector.load %arg7[%c0_15, %c0_16] : memref<1x128xf32, #tpu.memory_space<vmem>>, vector<1x128xf32>
    %21 = vector.broadcast %20 : vector<1x128xf32> to vector<8x128xf32>
    %22 = arith.addf %19, %21 : vector<8x128xf32>
    %23 = arith.truncf %22 : vector<8x128xf32> to vector<8x128xbf16>
    %cst_17 = arith.constant 0.000000e+00 : bf16
    %24 = vector.broadcast %cst_17 : bf16 to vector<8x128xbf16>
    %25 = arith.maximumf %23, %24 : vector<8x128xbf16>
    %c0_18 = arith.constant 0 : index
    %c0_19 = arith.constant 0 : index
    %26 = vector.load %arg8[%c0_18, %c0_19] : memref<1x128xbf16, #tpu.memory_space<vmem>>, vector<1x128xbf16>
    %cst_20 = arith.constant dense<0.000000e+00> : vector<1x8xf32>
    %27 = tpu.matmul %26, %25, %cst_20 {dimension_numbers = #tpu.dot_dimension_numbers<[1], [1], [0], [0], [0, 0, 1, 0], [], []>} : vector<1x128xbf16>, vector<8x128xbf16>, vector<1x8xf32> -> vector<1x8xf32>
    %c0_21 = arith.constant 0 : index
    %c0_22 = arith.constant 0 : index
    %28 = vector.load %arg9[%c0_21, %c0_22] : memref<1x1xf32, #tpu.memory_space<vmem>>, vector<1x1xf32>
    %29 = vector.broadcast %28 : vector<1x1xf32> to vector<1x8xf32>
    %30 = arith.addf %27, %29 : vector<1x8xf32>
    %31 = vector.shape_cast %30 : vector<1x8xf32> to vector<1x1x8xf32>
    %c0_23 = arith.constant 0 : index
    %c0_24 = arith.constant 0 : index
    %c0_25 = arith.constant 0 : index
    %32 = vector.load %arg10[%c0_23, %c0_24, %c0_25] : memref<1x1x8xf32, #tpu.memory_space<vmem>>, vector<1x1x8xf32>
    tpu.vector_store %arg10[%c0_23, %c0_24, %c0_25], %31 {strides = array<i32>} : memref<1x1x8xf32, #tpu.memory_space<vmem>>, vector<1x1x8xf32>,
    return
  }
  func.func @transform_0(%arg0: i32) -> (i32, i32) {
    %c0_i32 = arith.constant 0 : i32
    %c0_i32_0 = arith.constant 0 : i32
    return %arg0, %c0_i32 : i32, i32
  }
  func.func @transform_1(%arg0: i32) -> (i32, i32) {
    %c0_i32 = arith.constant 0 : i32
    %c0_i32_0 = arith.constant 0 : i32
    %c0_i32_1 = arith.constant 0 : i32
    return %c0_i32, %c0_i32_0 : i32, i32
  }
  func.func @transform_2(%arg0: i32) -> (i32, i32) {
    %c0_i32 = arith.constant 0 : i32
    %c0_i32_0 = arith.constant 0 : i32
    %c0_i32_1 = arith.constant 0 : i32
    return %c0_i32, %c0_i32_0 : i32, i32
  }
  func.func @transform_3(%arg0: i32) -> (i32, i32) {
    %c0_i32 = arith.constant 0 : i32
    %c0_i32_0 = arith.constant 0 : i32
    %c0_i32_1 = arith.constant 0 : i32
    return %c0_i32, %c0_i32_0 : i32, i32
  }
  func.func @transform_4(%arg0: i32) -> (i32, i32) {
    %c0_i32 = arith.constant 0 : i32
    %c0_i32_0 = arith.constant 0 : i32
    %c0_i32_1 = arith.constant 0 : i32
    return %c0_i32, %c0_i32_0 : i32, i32
  }
  func.func @transform_5(%arg0: i32) -> (i32, i32) {
    %c0_i32 = arith.constant 0 : i32
    %c0_i32_0 = arith.constant 0 : i32
    %c0_i32_1 = arith.constant 0 : i32
    return %c0_i32, %c0_i32_0 : i32, i32
  }
  func.func @transform_6(%arg0: i32) -> (i32, i32) {
    %c0_i32 = arith.constant 0 : i32
    %c0_i32_0 = arith.constant 0 : i32
    %c0_i32_1 = arith.constant 0 : i32
    return %c0_i32, %c0_i32_0 : i32, i32
  }
  func.func @transform_7(%arg0: i32) -> (i32, i32) {
    %c0_i32 = arith.constant 0 : i32
    %c0_i32_0 = arith.constant 0 : i32
    %c0_i32_1 = arith.constant 0 : i32
    return %c0_i32, %c0_i32_0 : i32, i32
  }
  func.func @transform_8(%arg0: i32) -> (i32, i32) {
    %c0_i32 = arith.constant 0 : i32
    %c0_i32_0 = arith.constant 0 : i32
    %c0_i32_1 = arith.constant 0 : i32
    return %c0_i32, %c0_i32_0 : i32, i32
  }
  func.func @transform_9(%arg0: i32) -> (i32, i32, i32) {
    %c0_i32 = arith.constant 0 : i32
    %c0_i32_0 = arith.constant 0 : i32
    %c0_i32_1 = arith.constant 0 : i32
    return %arg0, %c0_i32, %c0_i32_0 : i32, i32, i32
  }
}

</mosaic_0001>

<bundles_post_ra>
// kernel: tpu_custom_call.1
= control target key start
LH: loop header
LB: loop body
LE: loop exit
PB: predicated region body
PF: predicated region fallthrough
CT: control target
= control target key end

     0   :  { %s3053_s0 = inlined_call_operand.hbm [shape: f32[8,459], index: 0, kind: input, shape index: {}]   ;;  %s3054_s1 = inlined_call_operand.hbm [shape: bf16[459,512], index: 1, kind: input, shape index: {}]   ;;  %s3055_s2 = inlined_call_operand.hbm [shape: f32[1,512], index: 2, kind: input, shape index: {}]   ;;  %s3056_s3 = inlined_call_operand.hbm [shape: bf16[512,256], index: 3, kind: input, shape index: {}]   ;;  %s3057_s4 = inlined_call_operand.vmem [shape: f32[1,256], index: 4, kind: input, shape index: {}]   ;;  %s3058_s5 = inlined_call_operand.hbm [shape: bf16[256,128], index: 5, kind: input, shape index: {}]   ;;  %s3059_s6 = inlined_call_operand.vmem [shape: f32[1,128], index: 6, kind: input, shape index: {}]   ;;  %s3060_s7 = inlined_call_operand.vmem [shape: bf16[1,128], index: 7, kind: input, shape index: {}]   ;;  %s3061_s8 = inlined_call_operand.<no memory space> [shape: f32[1,1], index: 8, kind: input, shape index: {}]   ;;  %s3062_s9 = inlined_call_operand.hbm [shape: f32[1,1,8], index: 9, kind: output, shape index: {}]  }
   0x1   :  { %v14_v0 = vstv %s3061_s8 }
   0x2   :  { %15 = vst [vmem:[#allocation2] sm:$0x1] %v14_v0 }
   0x3   :  { %16 = vsyncpa [#allocation4], 0 }
   0x4   :  { %17 = vsyncpa [#allocation7], 0 }
   0x5   :  { %18 = vsyncpa [#allocation10], 0  ;;  %s35_s13 = sshll.u32 %s3054_s1, 4  ;;  %s36_s13 = int_to_ptr.hbm [resolvable:$true] %s35_s13 }
   0x6   :  { %19 = vsyncpa [#allocation5], 0  ;;  %s2919_s14 = smov [#allocation6]   ;;  %s59_s18 = sshll.u32 %s3056_s3, 4  ;;  %s60_s18 = int_to_ptr.hbm [resolvable:$true] %s59_s18 }
   0x7   :  { %s37_s15 = sshll.u32 %s2919_s14, 4  ;;  %s2920_s19 = smov 256   ;;  %s38_s15 = int_to_ptr.vmem [resolvable:$true] %s37_s15 }
   0x8   :  { %s2921_s20 = smov 16   ;;  %s2922_s8 = smov [#allocation9]  }
   0x9   :  { %43 = dma.hbm_to_vmem [thread:$0]  %s36_s13, 14848, %s38_s15, [#allocation7], %s2920_s19, %s2920_s19, %s2921_s20  }
   0xa   :  { %s61_s21 = sshll.u32 %s2922_s8, 4  ;;  %s2923_s22 = smov 128   ;;  %s62_s21 = int_to_ptr.vmem [resolvable:$true] %s61_s21 }
   0xb   :  { %s2924_s23 = smov 8   ;;  %s25_s25 = sshll.u32 %s3053_s0, 4  ;;  %s26_s25 = int_to_ptr.hbm [resolvable:$true] %s25_s25 }
   0xc   :  { %67 = dma.hbm_to_vmem [thread:$0]  %s60_s18, 8192, %s62_s21, [#allocation10], %s2923_s22, %s2923_s22, %s2924_s23  }
   0xd   :  { %s2925_s26 = smov [#allocation3]   ;;  %s49_s29 = sshll.u32 %s3055_s2, 4  ;;  %s50_s29 = int_to_ptr.hbm [resolvable:$true] %s49_s29 }
   0xe   :  { %s27_s27 = sshll.u32 %s2925_s26, 4  ;;  %s2926_s30 = smov [#allocation8]   ;;  %s28_s27 = int_to_ptr.vmem [resolvable:$true] %s27_s27 }
   0xf   :  { %30 = dma.hbm_to_vmem [thread:$0]  %s26_s25, 512, %s28_s27, [#allocation4]  }
  0x10   :  { %s51_s10 = sshll.u32 %s2926_s30, 4  ;;  %s74_s13 = sshll.u32 %s3058_s5, 4  ;;  %s52_s10 = int_to_ptr.vmem [resolvable:$true] %s51_s10  ;;  %s75_s13 = int_to_ptr.hbm [resolvable:$true] %s74_s13 }
  0x11   :  { %54 = dma.hbm_to_vmem [thread:$0]  %s50_s29, 64, %s52_s10, [#allocation7]  }
  0x12   :  { %s2927_s0 = smov [#allocation11]   ;;  %s2928_s15 = smov 64  }
  0x13   :  { %s76_s14 = sshll.u32 %s2927_s0, 4  ;;  %s2929_s16 = smov 4   ;;  %s77_s14 = int_to_ptr.vmem [resolvable:$true] %s76_s14 }
  0x14   :  { %82 = dma.hbm_to_vmem [thread:$0]  %s75_s13, 2048, %s77_s14, [#allocation10], %s2928_s15, %s2928_s15, %s2929_s16  }
  0x15   :  { %2911 = dma.done.wait [#allocation4], 512  }
  0x16   :  { %2912 = vsyncadd [#allocation4], 4294966784 }
  0x17   :  { %2913 = dma.done.wait [#allocation7], 14912  }
  0x18   :  { %2914 = vsyncadd [#allocation7], 4294952384 }
  0x19   :  { %2915 = dma.done.wait [#allocation10], 10240  }
  0x1a   :  { %2916 = vsyncadd [#allocation10], 4294957056  ;;  %vm824_vm0 = vcmask 1044480   ;;  %vm825_vm1 = vcmask 1045504   ;;  %v2930_v1 = vmov 65535   ;;  %vm820_vm2 = vcmask 613376  }
  0x1b   :  { %v826_v2 = vsel %vm824_vm0, 4294967295, %v2930_v1  ;;  %v1881_v4 = vld [vmem:[#allocation6 + $0xe0] sm:$0xf]  ;;  %v2585_v5 = vld [vmem:[#allocation6 + $0xec] sm:$0xf0]  ;;  %s2932_s20 = smov [#allocation12]  }
  0x1c   :  { %v3001_v3 = vsel %vm825_vm1, %v826_v2, 0  ;;  %v2137_v6 = vld [vmem:[#allocation6 + $0x2e0] sm:$0xf]  ;;  %v1882_v7 = vor.u32 %v2585_v5, %v1881_v4  ;;  %v2649_v8 = vld [vmem:[#allocation6 + $0x2ec] sm:$0xf0]  ;;  %s1753_s8 = sshll.u32 %s2932_s20, 4  ;;  %s1754_s8 = int_to_ptr.vmem [resolvable:$true] %s1753_s8 }
  0x1d   :  { %v2009_v9 = vld [vmem:[#allocation6 + $0x1e0] sm:$0xf]  ;;  %v2617_v10 = vld [vmem:[#allocation6 + $0x1ec] sm:$0xf0]  ;;  %v2138_v11 = vor.u32 %v2649_v8, %v2137_v6  ;;  %v2583_v0 = vld [vmem:[#allocation6 + $0xe4] sm:$0xf] }
  0x1e   :  { %v2010_v12 = vor.u32 %v2617_v10, %v2009_v9  ;;  %v2217_v13 = vld [vmem:[#allocation6 + $0x380] sm:$0xf]  ;;  %v2669_v14 = vld [vmem:[#allocation6 + $0x38c] sm:$0x30]  ;;  %840 = vmatpush.bf16.msra.mxu0 %v1882_v7  ;;  %v1883_v4 = vld [vmem:[#allocation6 + $0xf0] sm:$0xf0] }
  0x1f   :  { %v1865_v15 = vld [vmem:[#allocation6 + $0xc0] sm:$0xf]  ;;  %v2218_v16 = vor.u32 %v2669_v14, %v2217_v13  ;;  %v2581_v17 = vld [vmem:[#allocation6 + $0xcc] sm:$0xf0]  ;;  %866 = vmatpush.bf16.msra.mxu2 %v2138_v11  ;;  %v1886_v11 = vor.u32 %v2583_v0, %v1883_v4  ;;  %v2579_v13 = vld [vmem:[#allocation6 + $0xc4] sm:$0xf] }
  0x20   :  { %v2121_v18 = vld [vmem:[#allocation6 + $0x2c0] sm:$0xf]  ;;  %v2645_v19 = vld [vmem:[#allocation6 + $0x2cc] sm:$0xf0]  ;;  %853 = vmatpush.bf16.msra.mxu1 %v2010_v12  ;;  %v1866_v20 = vor.u32 %v2581_v17, %v1865_v15  ;;  %v1867_v17 = vld [vmem:[#allocation6 + $0xd0] sm:$0xf0] }
  0x21   :  { %v2122_v21 = vor.u32 %v2645_v19, %v2121_v18  ;;  %v1993_v22 = vld [vmem:[#allocation6 + $0x1c0] sm:$0xf]  ;;  %v2613_v23 = vld [vmem:[#allocation6 + $0x1cc] sm:$0xf0]  ;;  %v829_v25 = vand.u32 %v2218_v16, %v3001_v3  ;;  %v1819_v4 = vld [vmem:[#allocation6 + $0x70] sm:$0xf0] }
  0x22   :  { %v2201_v24 = vld [vmem:[#allocation6 + $0x360] sm:$0xf]  ;;  %v1994_v26 = vor.u32 %v2613_v23, %v1993_v22  ;;  %v2665_v27 = vld [vmem:[#allocation6 + $0x36c] sm:$0xf0]  ;;  %841 = vmatpush.bf16.msra.mxu0 %v1866_v20  ;;  %v2575_v23 = vld [vmem:[#allocation6 + $0xa4] sm:$0xf] }
  0x23   :  { %v1849_v28 = vld [vmem:[#allocation6 + $0xa0] sm:$0xf]  ;;  %v2577_v29 = vld [vmem:[#allocation6 + $0xac] sm:$0xf0]  ;;  %882 = vmatpush.bf16.msra.mxu3 %v829_v25  ;;  %v2202_v33 = vor.u32 %v2665_v27, %v2201_v24  ;;  %867 = vmatpush.bf16.msra.mxu2 %v2122_v21  ;;  %v1851_v24 = vld [vmem:[#allocation6 + $0xb0] sm:$0xf0]  ;;  %v1870_v27 = vor.u32 %v2579_v13, %v1867_v17 }
  0x24   :  { %v2105_v30 = vld [vmem:[#allocation6 + $0x2a0] sm:$0xf]  ;;  %v2641_v31 = vld [vmem:[#allocation6 + $0x2ac] sm:$0xf0]  ;;  %v1850_v34 = vor.u32 %v2577_v29, %v1849_v28  ;;  %854 = vmatpush.bf16.msra.mxu1 %v1994_v26  ;;  %v2667_v25 = vld [vmem:[#allocation6 + $0x384] sm:$0xf] }
  0x25   :  { %v1977_v32 = vld [vmem:[#allocation6 + $0x1a0] sm:$0xf]  ;;  %v2609_v35 = vld [vmem:[#allocation6 + $0x1ac] sm:$0xf0]  ;;  %v2106_v38 = vor.u32 %v2641_v31, %v2105_v30  ;;  %v2219_v26 = vld [vmem:[#allocation6 + $0x390] sm:$0x30] }
  0x26   :  { %v2185_v36 = vld [vmem:[#allocation6 + $0x340] sm:$0xf]  ;;  %v2661_v37 = vld [vmem:[#allocation6 + $0x34c] sm:$0xf0]  ;;  %v1978_v39 = vor.u32 %v2609_v35, %v1977_v32  ;;  %842 = vmatpush.bf16.msra.mxu0 %v1850_v34  ;;  %v113_v31 = vld [vmem:[#allocation3 + $0x18] sm:$0xff]  ;;  %vm1746_vm3 = vcmask 57344  }
  0x27   :  { %v1833_v40 = vld [vmem:[#allocation6 + $0x80] sm:$0xf]  ;;  %v2573_v41 = vld [vmem:[#allocation6 + $0x8c] sm:$0xf0]  ;;  %883 = vmatpush.bf16.msra.mxu3 %v2202_v33  ;;  %v2186_v46 = vor.u32 %v2661_v37, %v2185_v36  ;;  %868 = vmatpush.bf16.msra.mxu2 %v2106_v38  ;;  %v2615_v35 = vld [vmem:[#allocation6 + $0x1e4] sm:$0xf]  ;;  %v3004_v36 = vpack.c.bf16 %v113_v31, %v113_v31 }
  0x28   :  { %v2089_v42 = vld [vmem:[#allocation6 + $0x280] sm:$0xf]  ;;  %v2637_v43 = vld [vmem:[#allocation6 + $0x28c] sm:$0xf0]  ;;  %v1834_v47 = vor.u32 %v2573_v41, %v1833_v40  ;;  %855 = vmatpush.bf16.msra.mxu1 %v1978_v39  ;;  %v2011_v37 = vld [vmem:[#allocation6 + $0x1f0] sm:$0xf0]  ;;  %v2222_v40 = vor.u32 %v2667_v25, %v2219_v26 }
  0x29   :  { %v1961_v44 = vld [vmem:[#allocation6 + $0x180] sm:$0xf]  ;;  %v2605_v45 = vld [vmem:[#allocation6 + $0x18c] sm:$0xf0]  ;;  %v2090_v50 = vor.u32 %v2637_v43, %v2089_v42  ;;  %v2647_v42 = vld [vmem:[#allocation6 + $0x2e4] sm:$0xf] }
  0x2a   :  { %v2169_v48 = vld [vmem:[#allocation6 + $0x320] sm:$0xf]  ;;  %v2657_v49 = vld [vmem:[#allocation6 + $0x32c] sm:$0xf0]  ;;  %v1962_v51 = vor.u32 %v2605_v45, %v1961_v44  ;;  %843 = vmatpush.bf16.msra.mxu0 %v1834_v47  ;;  %v2139_v43 = vld [vmem:[#allocation6 + $0x2f0] sm:$0xf0]  ;;  %v1854_v44 = vor.u32 %v2575_v23, %v1851_v24 }
  0x2b   :  { %v1817_v52 = vld [vmem:[#allocation6 + $0x60] sm:$0xf]  ;;  %v2569_v53 = vld [vmem:[#allocation6 + $0x6c] sm:$0xf0]  ;;  %884 = vmatpush.bf16.msra.mxu3 %v2186_v46  ;;  %v2170_v58 = vor.u32 %v2657_v49, %v2169_v48  ;;  %869 = vmatpush.bf16.msra.mxu2 %v2090_v50  ;;  %v2014_v48 = vor.u32 %v2615_v35, %v2011_v37  ;;  %v2571_v50 = vld [vmem:[#allocation6 + $0x84] sm:$0xf] }
  0x2c   :  { %v2073_v54 = vld [vmem:[#allocation6 + $0x260] sm:$0xf]  ;;  %v2633_v55 = vld [vmem:[#allocation6 + $0x26c] sm:$0xf0]  ;;  %v1818_v59 = vor.u32 %v2569_v53, %v1817_v52  ;;  %856 = vmatpush.bf16.msra.mxu1 %v1962_v51  ;;  %v1835_v51 = vld [vmem:[#allocation6 + $0x90] sm:$0xf0]  ;;  %v832_v53 = vand.u32 %v2222_v40, %v3001_v3 }
  0x2d   :  { %v1945_v56 = vld [vmem:[#allocation6 + $0x160] sm:$0xf]  ;;  %v2601_v57 = vld [vmem:[#allocation6 + $0x16c] sm:$0xf0]  ;;  %v2074_v62 = vor.u32 %v2633_v55, %v2073_v54  ;;  %v111_v52 = vld [vmem:[#allocation3 + $0x8] sm:$0xff]  ;;  %v2142_v54 = vor.u32 %v2647_v42, %v2139_v43 }
  0x2e   :  { %v2153_v60 = vld [vmem:[#allocation6 + $0x300] sm:$0xf]  ;;  %v2653_v61 = vld [vmem:[#allocation6 + $0x30c] sm:$0xf0]  ;;  %v1946_v63 = vor.u32 %v2601_v57, %v1945_v56  ;;  %844 = vmatpush.bf16.msra.mxu0 %v1818_v59  ;;  %v2611_v55 = vld [vmem:[#allocation6 + $0x1c4] sm:$0xf]  ;;  %v3013_v0 = vpack.c.bf16 %v111_v52, %v111_v52 }
  0x2f   :  { %v1801_v1 = vld [vmem:[#allocation6 + $0x40] sm:$0xf]  ;;  %v2565_v2 = vld [vmem:[#allocation6 + $0x4c] sm:$0xf0]  ;;  %885 = vmatpush.bf16.msra.mxu3 %v2170_v58  ;;  %v2154_v9 = vor.u32 %v2653_v61, %v2153_v60  ;;  %870 = vmatpush.bf16.msra.mxu2 %v2074_v62  ;;  %v1995_v56 = vld [vmem:[#allocation6 + $0x1d0] sm:$0xf0] }
  0x30   :  { %v2057_v5 = vld [vmem:[#allocation6 + $0x240] sm:$0xf]  ;;  %v2629_v6 = vld [vmem:[#allocation6 + $0x24c] sm:$0xf0]  ;;  %v1802_v10 = vor.u32 %v2565_v2, %v1801_v1  ;;  %857 = vmatpush.bf16.msra.mxu1 %v1946_v63  ;;  %v2663_v57 = vld [vmem:[#allocation6 + $0x364] sm:$0xf]  ;;  %v1838_v63 = vor.u32 %v2571_v50, %v1835_v51  ;;  %v1998_v1 = vor.u32 %v2611_v55, %v1995_v56 }
  0x31   :  { %v1929_v7 = vld [vmem:[#allocation6 + $0x140] sm:$0xf]  ;;  %v2597_v8 = vld [vmem:[#allocation6 + $0x14c] sm:$0xf0]  ;;  %v2058_v12 = vor.u32 %v2629_v6, %v2057_v5  ;;  %v2203_v60 = vld [vmem:[#allocation6 + $0x370] sm:$0xf0] }
  0x32   :  { %v1785_v14 = vld [vmem:[#allocation6 + $0x20] sm:$0xf]  ;;  %v2561_v15 = vld [vmem:[#allocation6 + $0x2c] sm:$0xf0]  ;;  %v1930_v16 = vor.u32 %v2597_v8, %v1929_v7  ;;  %845 = vmatpush.bf16.msra.mxu0 %v1802_v10  ;;  %v2643_v61 = vld [vmem:[#allocation6 + $0x2c4] sm:$0xf]  ;;  %v2206_v5 = vor.u32 %v2663_v57, %v2203_v60 }
  0x33   :  { %v2041_v18 = vld [vmem:[#allocation6 + $0x220] sm:$0xf]  ;;  %v2625_v19 = vld [vmem:[#allocation6 + $0x22c] sm:$0xf0]  ;;  %886 = vmatpush.bf16.msra.mxu3 %v2154_v9  ;;  %v1786_v22 = vor.u32 %v2561_v15, %v1785_v14  ;;  %871 = vmatpush.bf16.msra.mxu2 %v2058_v12  ;;  %v2123_v62 = vld [vmem:[#allocation6 + $0x2d0] sm:$0xf0] }
  0x34   :  { %v1913_v20 = vld [vmem:[#allocation6 + $0x120] sm:$0xf]  ;;  %v2593_v21 = vld [vmem:[#allocation6 + $0x12c] sm:$0xf0]  ;;  %v2042_v28 = vor.u32 %v2625_v19, %v2041_v18  ;;  %858 = vmatpush.bf16.msra.mxu1 %v1930_v16  ;;  %v2567_v2 = vld [vmem:[#allocation6 + $0x64] sm:$0xf]  ;;  %v2126_v6 = vor.u32 %v2643_v61, %v2123_v62 }
  0x35   :  { %v1769_v29 = vld [vmem:[#allocation6] sm:$0xf]  ;;  %v2557_v30 = vld [vmem:[#allocation6 + $0xc] sm:$0xf0]  ;;  %v1914_v32 = vor.u32 %v2593_v21, %v1913_v20  ;;  %v2607_v7 = vld [vmem:[#allocation6 + $0x1a4] sm:$0xf]  ;;  %v1822_v13 = vor.u32 %v2567_v2, %v1819_v4 }
  0x36   :  { %v2025_v33 = vld [vmem:[#allocation6 + $0x200] sm:$0xf]  ;;  %v2621_v34 = vld [vmem:[#allocation6 + $0x20c] sm:$0xf0]  ;;  %846 = vmatpush.bf16.msra.mxu0 %v1786_v22  ;;  %v1770_v41 = vor.u32 %v2557_v30, %v1769_v29  ;;  %2231 = vmatmul.msk.bf16.vlgmr.msra.gmra.mxu3 %vm820_vm2, %v3004_v36  ;;  %v1979_v8 = vld [vmem:[#allocation6 + $0x1b0] sm:$0xf0] }
  0x37   :  { %892 = vmatpush.bf16.msrb.mxu3 %v1886_v11  ;;  %v1897_v38 = vld [vmem:[#allocation6 + $0x100] sm:$0xf]  ;;  %v2589_v39 = vld [vmem:[#allocation6 + $0x10c] sm:$0xf0]  ;;  %872 = vmatpush.bf16.msra.mxu2 %v2042_v28  ;;  %v2026_v45 = vor.u32 %v2621_v34, %v2025_v33  ;;  %v2659_v9 = vld [vmem:[#allocation6 + $0x344] sm:$0xf]  ;;  %v1982_v14 = vor.u32 %v2607_v7, %v1979_v8 }
  0x38   :  { %v112_v46 = vld [vmem:[#allocation3 + $0x10] sm:$0xff]  ;;  %v110_v47 = vld [vmem:[#allocation3] sm:$0xff]  ;;  %859 = vmatpush.bf16.msra.mxu1 %v1914_v32  ;;  %v1898_v49 = vor.u32 %v2589_v39, %v1897_v38  ;;  %v1889_v39 = vld [vmem:[#allocation6 + $0xe8] sm:$0xf] }
  0x39   :  { %v3009_v58 = vpack.c.bf16 %v112_v46, %v112_v46  ;;  %v3011_v59 = vpack.c.bf16 %v110_v47, %v110_v47  ;;  %v2187_v10 = vld [vmem:[#allocation6 + $0x350] sm:$0xf0]  ;;  %v2639_v11 = vld [vmem:[#allocation6 + $0x2a4] sm:$0xf]  ;;  %v2586_v40 = vld [vmem:[#allocation6 + $0xf4] sm:$0xf0] }
  0x3a   :  { %847 = vmatpush.bf16.msra.mxu0 %v1770_v41  ;;  %v2107_v12 = vld [vmem:[#allocation6 + $0x2b0] sm:$0xf0]  ;;  %v2563_v15 = vld [vmem:[#allocation6 + $0x44] sm:$0xf]  ;;  %v2190_v17 = vor.u32 %v2659_v9, %v2187_v10  ;;  %v2618_v47 = vld [vmem:[#allocation6 + $0x1f4] sm:$0xf0]  ;;  %v1890_v50 = vor.u32 %v2586_v40, %v1889_v39 }
  0x3b   :  { %893 = vmatpush.bf16.msrb.mxu3 %v1870_v27  ;;  %873 = vmatpush.bf16.msra.mxu2 %v2026_v45  ;;  %v1803_v16 = vld [vmem:[#allocation6 + $0x50] sm:$0xf0]  ;;  %v2110_v18 = vor.u32 %v2639_v11, %v2107_v12  ;;  %v2603_v19 = vld [vmem:[#allocation6 + $0x184] sm:$0xf]  ;;  %v2582_v55 = vld [vmem:[#allocation6 + $0xd4] sm:$0xf0] }
  0x3c   :  { %860 = vmatpush.bf16.msra.mxu1 %v1898_v49  ;;  %v1963_v20 = vld [vmem:[#allocation6 + $0x190] sm:$0xf0]  ;;  %v2655_v21 = vld [vmem:[#allocation6 + $0x324] sm:$0xf]  ;;  %v1806_v25 = vor.u32 %v2563_v15, %v1803_v16  ;;  %v2001_v60 = vld [vmem:[#allocation6 + $0x1c8] sm:$0xf] }
  0x3d   :  { %848 = vmatmul.bf16.vlgmr.msra.gmra.mxu0 %v3011_v59  ;;  %v2171_v22 = vld [vmem:[#allocation6 + $0x330] sm:$0xf0]  ;;  %v2635_v23 = vld [vmem:[#allocation6 + $0x284] sm:$0xf]  ;;  %v1966_v26 = vor.u32 %v2603_v19, %v1963_v20  ;;  %v2614_v62 = vld [vmem:[#allocation6 + $0x1d4] sm:$0xf0] }
  0x3e   :  { %905 = vmatpush.bf16.msrb.mxu0 %v2014_v48  ;;  %874 = vmatmul.bf16.vlgmr.msra.gmra.mxu2 %v3009_v58  ;;  %v2091_v24 = vld [vmem:[#allocation6 + $0x290] sm:$0xf0]  ;;  %v2559_v27 = vld [vmem:[#allocation6 + $0x24] sm:$0xf]  ;;  %v2174_v29 = vor.u32 %v2655_v21, %v2171_v22  ;;  %v2578_v7 = vld [vmem:[#allocation6 + $0xb4] sm:$0xf0]  ;;  %v2002_v10 = vor.u32 %v2614_v62, %v2001_v60 }
  0x3f   :  { %894 = vmatpush.bf16.msrb.mxu3 %v1854_v44  ;;  %934 = vmatpush.bf16.msrb.mxu2 %v832_v53  ;;  %v1787_v28 = vld [vmem:[#allocation6 + $0x30] sm:$0xf0]  ;;  %v2094_v30 = vor.u32 %v2635_v23, %v2091_v24  ;;  %v2599_v31 = vld [vmem:[#allocation6 + $0x164] sm:$0xf]  ;;  %v2017_v44 = vld [vmem:[#allocation6 + $0x1e8] sm:$0xf] }
  0x40   :  { %918 = vmatpush.bf16.msrb.mxu1 %v2142_v54  ;;  %v1947_v32 = vld [vmem:[#allocation6 + $0x170] sm:$0xf0]  ;;  %v2651_v33 = vld [vmem:[#allocation6 + $0x304] sm:$0xf]  ;;  %v1790_v38 = vor.u32 %v2559_v27, %v1787_v28  ;;  %v1873_v54 = vld [vmem:[#allocation6 + $0xc8] sm:$0xf]  ;;  %v2018_v56 = vor.u32 %v2618_v47, %v2017_v44 }
  0x41   :  { %861 = vmatmul.bf16.vlgmr.msra.gmra.mxu1 %v3013_v0  ;;  %v2155_v34 = vld [vmem:[#allocation6 + $0x310] sm:$0xf0]  ;;  %v2631_v35 = vld [vmem:[#allocation6 + $0x264] sm:$0xf]  ;;  %v1950_v41 = vor.u32 %v2599_v31, %v1947_v32  ;;  %v1874_v2 = vor.u32 %v2582_v55, %v1873_v54  ;;  %v2225_v8 = vld [vmem:[#allocation6 + $0x388] sm:$0xf] }
  0x42   :  { %906 = vmatpush.bf16.msrb.mxu0 %v1998_v1  ;;  %v2075_v37 = vld [vmem:[#allocation6 + $0x270] sm:$0xf0]  ;;  %v2555_v42 = vld [vmem:[#allocation6 + $0x4] sm:$0xf]  ;;  %v2158_v45 = vor.u32 %v2651_v33, %v2155_v34  ;;  %v2670_v9 = vld [vmem:[#allocation6 + $0x394] sm:$0x30] }
  0x43   :  { %895 = vmatpush.bf16.msrb.mxu3 %v1838_v63  ;;  %935 = vmatpush.bf16.msrb.mxu2 %v2206_v5  ;;  %v1771_v43 = vld [vmem:[#allocation6 + $0x10] sm:$0xf0]  ;;  %v2078_v46 = vor.u32 %v2631_v35, %v2075_v37  ;;  %v2595_v48 = vld [vmem:[#allocation6 + $0x144] sm:$0xf]  ;;  %v1985_v12 = vld [vmem:[#allocation6 + $0x1a8] sm:$0xf]  ;;  %v2226_v22 = vor.u32 %v2670_v9, %v2225_v8 }
  0x44   :  { %919 = vmatpush.bf16.msrb.mxu1 %v2126_v6  ;;  %v1931_v49 = vld [vmem:[#allocation6 + $0x150] sm:$0xf0]  ;;  %v2627_v51 = vld [vmem:[#allocation6 + $0x244] sm:$0xf]  ;;  %v1774_v53 = vor.u32 %v2555_v42, %v1771_v43  ;;  %v1857_v6 = vld [vmem:[#allocation6 + $0xa8] sm:$0xf] }
  0x45   :  { %v2059_v52 = vld [vmem:[#allocation6 + $0x250] sm:$0xf0]  ;;  %v1934_v57 = vor.u32 %v2595_v48, %v1931_v49  ;;  %v2591_v63 = vld [vmem:[#allocation6 + $0x124] sm:$0xf]  ;;  %v2650_v19 = vld [vmem:[#allocation6 + $0x2f4] sm:$0xf0]  ;;  %v835_v35 = vand.u32 %v2226_v22, %v3001_v3 }
  0x46   :  { %907 = vmatpush.bf16.msrb.mxu0 %v1982_v14  ;;  %v2062_v61 = vor.u32 %v2627_v51, %v2059_v52  ;;  %v1915_v1 = vld [vmem:[#allocation6 + $0x130] sm:$0xf0]  ;;  %v2623_v4 = vld [vmem:[#allocation6 + $0x224] sm:$0xf]  ;;  %v1841_v23 = vld [vmem:[#allocation6 + $0x88] sm:$0xf] }
  0x47   :  { %896 = vmatpush.bf16.msrb.mxu3 %v1822_v13  ;;  %936 = vmatpush.bf16.msrb.mxu2 %v2190_v17  ;;  %v2043_v5 = vld [vmem:[#allocation6 + $0x230] sm:$0xf0]  ;;  %v1918_v11 = vor.u32 %v2591_v63, %v1915_v1  ;;  %v2610_v13 = vld [vmem:[#allocation6 + $0x1b4] sm:$0xf0]  ;;  %v2587_v15 = vld [vmem:[#allocation6 + $0x104] sm:$0xf] }
  0x48   :  { %920 = vmatpush.bf16.msrb.mxu1 %v2110_v18  ;;  %v2046_v14 = vor.u32 %v2623_v4, %v2043_v5  ;;  %v1899_v16 = vld [vmem:[#allocation6 + $0x110] sm:$0xf0]  ;;  %v2145_v17 = vld [vmem:[#allocation6 + $0x2e8] sm:$0xf]  ;;  %v1858_v18 = vor.u32 %v2578_v7, %v1857_v6  ;;  %v2619_v20 = vld [vmem:[#allocation6 + $0x204] sm:$0xf] }
  0x49   :  { %v2027_v21 = vld [vmem:[#allocation6 + $0x210] sm:$0xf0]  ;;  %v2574_v24 = vld [vmem:[#allocation6 + $0x94] sm:$0xf0]  ;;  %v2146_v27 = vor.u32 %v2650_v19, %v2145_v17  ;;  %v2129_v32 = vld [vmem:[#allocation6 + $0x2c8] sm:$0xf] }
  0x4a   :  { %908 = vmatpush.bf16.msrb.mxu0 %v1966_v26  ;;  %v1902_v26 = vor.u32 %v2587_v15, %v1899_v16  ;;  %v2030_v28 = vor.u32 %v2619_v20, %v2027_v21  ;;  %v1842_v31 = vor.u32 %v2574_v24, %v1841_v23  ;;  %v2646_v33 = vld [vmem:[#allocation6 + $0x2d4] sm:$0xf0]  ;;  %v1825_v34 = vld [vmem:[#allocation6 + $0x68] sm:$0xf]  ;;  %v2584_v19 = vld [vmem:[#allocation6 + $0xec] sm:$0xf] }
  0x4b   :  { %897 = vmatpush.bf16.msrb.mxu3 %v1806_v25  ;;  %937 = vmatpush.bf16.msrb.mxu2 %v2174_v29  ;;  %v1986_v25 = vor.u32 %v2610_v13, %v1985_v12  ;;  %v1969_v29 = vld [vmem:[#allocation6 + $0x188] sm:$0xf]  ;;  %v2570_v37 = vld [vmem:[#allocation6 + $0x74] sm:$0xf0]  ;;  %v1891_v20 = vld [vmem:[#allocation6 + $0xf8] sm:$0xf0] }
  0x4c   :  { %921 = vmatpush.bf16.msrb.mxu1 %v2094_v30  ;;  %v2606_v30 = vld [vmem:[#allocation6 + $0x194] sm:$0xf0]  ;;  %v1953_v42 = vld [vmem:[#allocation6 + $0x168] sm:$0xf]  ;;  %v1826_v44 = vor.u32 %v2570_v37, %v1825_v34  ;;  %v2648_v24 = vld [vmem:[#allocation6 + $0x2ec] sm:$0xf] }
  0x4d   :  { %v2666_v39 = vld [vmem:[#allocation6 + $0x374] sm:$0xf0]  ;;  %v1970_v40 = vor.u32 %v2606_v30, %v1969_v29  ;;  %v1809_v47 = vld [vmem:[#allocation6 + $0x48] sm:$0xf]  ;;  %v2003_v34 = vld [vmem:[#allocation6 + $0x1d8] sm:$0xf0] }
  0x4e   :  { %909 = vmatpush.bf16.msrb.mxu0 %v1950_v41  ;;  %v2130_v41 = vor.u32 %v2646_v33, %v2129_v32  ;;  %v2602_v43 = vld [vmem:[#allocation6 + $0x174] sm:$0xf0]  ;;  %v1937_v54 = vld [vmem:[#allocation6 + $0x148] sm:$0xf]  ;;  %v2612_v33 = vld [vmem:[#allocation6 + $0x1cc] sm:$0xf] }
  0x4f   :  { %898 = vmatpush.bf16.msrb.mxu3 %v1790_v38  ;;  %938 = vmatpush.bf16.msrb.mxu2 %v2158_v45  ;;  %v2209_v38 = vld [vmem:[#allocation6 + $0x368] sm:$0xf]  ;;  %v2566_v49 = vld [vmem:[#allocation6 + $0x54] sm:$0xf0]  ;;  %v1954_v52 = vor.u32 %v2602_v43, %v1953_v42 }
  0x50   :  { %922 = vmatpush.bf16.msrb.mxu1 %v2078_v46  ;;  %v2113_v45 = vld [vmem:[#allocation6 + $0x2a8] sm:$0xf]  ;;  %v2642_v46 = vld [vmem:[#allocation6 + $0x2b4] sm:$0xf0]  ;;  %v2210_v48 = vor.u32 %v2666_v39, %v2209_v38  ;;  %v2644_v38 = vld [vmem:[#allocation6 + $0x2cc] sm:$0xf] }
  0x51   :  { %v2662_v51 = vld [vmem:[#allocation6 + $0x354] sm:$0xf0]  ;;  %v2177_v1 = vld [vmem:[#allocation6 + $0x328] sm:$0xf]  ;;  %v2580_v39 = vld [vmem:[#allocation6 + $0xcc] sm:$0xf] }
  0x52   :  { %910 = vmatpush.bf16.msrb.mxu0 %v1934_v57  ;;  %2232 = vmatmul.msk.bf16.vlgmr.msrb.gmra.mxu2 %vm820_vm2, %v3004_v36  ;;  %v2598_v55 = vld [vmem:[#allocation6 + $0x154] sm:$0xf0]  ;;  %v2097_v57 = vld [vmem:[#allocation6 + $0x288] sm:$0xf] }
  0x53   :  { %944 = vmatpush.bf16.msra.mxu2 %v1890_v50  ;;  %899 = vmatpush.bf16.msrb.mxu3 %v1774_v53  ;;  %v2193_v50 = vld [vmem:[#allocation6 + $0x348] sm:$0xf]  ;;  %v2114_v53 = vor.u32 %v2642_v46, %v2113_v45  ;;  %v2638_v60 = vld [vmem:[#allocation6 + $0x294] sm:$0xf0]  ;;  %v1938_v4 = vor.u32 %v2598_v55, %v1937_v54  ;;  %v2608_v46 = vld [vmem:[#allocation6 + $0x1ac] sm:$0xf] }
  0x54   :  { %923 = vmatpush.bf16.msrb.mxu1 %v2062_v61  ;;  %v1793_v61 = vld [vmem:[#allocation6 + $0x28] sm:$0xf]  ;;  %v2194_v62 = vor.u32 %v2662_v51, %v2193_v50  ;;  %v2562_v63 = vld [vmem:[#allocation6 + $0x34] sm:$0xf0]  ;;  %v2098_v6 = vor.u32 %v2638_v60, %v2097_v57  ;;  %v2640_v50 = vld [vmem:[#allocation6 + $0x2ac] sm:$0xf] }
  0x55   :  { %v1921_v5 = vld [vmem:[#allocation6 + $0x128] sm:$0xf]  ;;  %v2594_v7 = vld [vmem:[#allocation6 + $0x134] sm:$0xf0]  ;;  %v2576_v51 = vld [vmem:[#allocation6 + $0xac] sm:$0xf] }
  0x56   :  { %900 = vmatmul.bf16.vlgmr.msrb.gmra.mxu3 %v3011_v59  ;;  %911 = vmatpush.bf16.msrb.mxu0 %v1918_v11  ;;  %v2081_v8 = vld [vmem:[#allocation6 + $0x268] sm:$0xf]  ;;  %v2634_v9 = vld [vmem:[#allocation6 + $0x274] sm:$0xf0]  ;;  %v1922_v17 = vor.u32 %v2594_v7, %v1921_v5  ;;  %v2604_v60 = vld [vmem:[#allocation6 + $0x18c] sm:$0xf] }
  0x57   :  { %957 = vmatpush.bf16.msra.mxu3 %v2018_v56  ;;  %945 = vmatpush.bf16.msra.mxu2 %v1874_v2  ;;  %v1810_v56 = vor.u32 %v2566_v49, %v1809_v47  ;;  %v2658_v2 = vld [vmem:[#allocation6 + $0x334] sm:$0xf0]  ;;  %v1777_v11 = vld [vmem:[#allocation6 + $0x8] sm:$0xf]  ;;  %v2082_v21 = vor.u32 %v2634_v9, %v2081_v8  ;;  %v1987_v47 = vld [vmem:[#allocation6 + $0x1b8] sm:$0xf0] }
  0x58   :  { %924 = vmatpush.bf16.msrb.mxu1 %v2046_v14  ;;  %v2558_v12 = vld [vmem:[#allocation6 + $0x14] sm:$0xf0]  ;;  %v2178_v13 = vor.u32 %v2658_v2, %v2177_v1  ;;  %v2616_v14 = vld [vmem:[#allocation6 + $0x1ec] sm:$0xf]  ;;  %v2161_v15 = vld [vmem:[#allocation6 + $0x308] sm:$0xf] }
  0x59   :  { %v2654_v16 = vld [vmem:[#allocation6 + $0x314] sm:$0xf0]  ;;  %v1905_v22 = vld [vmem:[#allocation6 + $0x108] sm:$0xf]  ;;  %v2572_v1 = vld [vmem:[#allocation6 + $0x8c] sm:$0xf] }
  0x5a   :  { %912 = vmatpush.bf16.msrb.mxu0 %v1902_v26  ;;  %v2590_v23 = vld [vmem:[#allocation6 + $0x114] sm:$0xf0]  ;;  %v2147_v26 = vld [vmem:[#allocation6 + $0x2f8] sm:$0xf0]  ;;  %v2162_v29 = vor.u32 %v2654_v16, %v2161_v15  ;;  %v2049_v42 = vld [vmem:[#allocation6 + $0x228] sm:$0xf] }
  0x5b   :  { %958 = vmatpush.bf16.msra.mxu3 %v2002_v10  ;;  %946 = vmatpush.bf16.msra.mxu2 %v1858_v18  ;;  %v1794_v10 = vor.u32 %v2562_v63, %v1793_v61  ;;  %v2019_v18 = vld [vmem:[#allocation6 + $0x1f8] sm:$0xf0]  ;;  %v1906_v32 = vor.u32 %v2590_v23, %v1905_v22  ;;  %v2626_v43 = vld [vmem:[#allocation6 + $0x234] sm:$0xf0]  ;;  %v2033_v54 = vld [vmem:[#allocation6 + $0x208] sm:$0xf] }
  0x5c   :  { %925 = vmatpush.bf16.msrb.mxu1 %v2030_v28  ;;  %v2630_v28 = vld [vmem:[#allocation6 + $0x254] sm:$0xf0]  ;;  %v2022_v30 = vor.u32 %v2616_v14, %v2019_v18  ;;  %v2050_v49 = vor.u32 %v2626_v43, %v2049_v42  ;;  %v1971_v61 = vld [vmem:[#allocation6 + $0x198] sm:$0xf0]  ;;  %v2600_v8 = vld [vmem:[#allocation6 + $0x16c] sm:$0xf] }
  0x5d   :  { %913 = vmatmul.bf16.vlgmr.msrb.gmra.mxu0 %v3013_v0  ;;  %v2622_v55 = vld [vmem:[#allocation6 + $0x214] sm:$0xf0]  ;;  %v1843_v2 = vld [vmem:[#allocation6 + $0x98] sm:$0xf0]  ;;  %v2628_v22 = vld [vmem:[#allocation6 + $0x24c] sm:$0xf] }
  0x5e   :  { %970 = vmatpush.bf16.msra.mxu0 %v2146_v27  ;;  %v2065_v27 = vld [vmem:[#allocation6 + $0x248] sm:$0xf]  ;;  %v2034_v63 = vor.u32 %v2622_v55, %v2033_v54  ;;  %v2099_v5 = vld [vmem:[#allocation6 + $0x298] sm:$0xf0]  ;;  %v1846_v7 = vor.u32 %v2572_v1, %v1843_v2  ;;  %v2357_v54 = vld [vmem:[#allocation9 + $0xf0] sm:$0xf] }
  0x5f   :  { %959 = vmatpush.bf16.msra.mxu3 %v1986_v25  ;;  %947 = vmatpush.bf16.msra.mxu2 %v1842_v31  ;;  %v1778_v25 = vor.u32 %v2558_v12, %v1777_v11  ;;  %v1894_v31 = vor.u32 %v2584_v19, %v1891_v20  ;;  %v2066_v37 = vor.u32 %v2630_v28, %v2065_v27  ;;  %v1955_v9 = vld [vmem:[#allocation6 + $0x178] sm:$0xf0]  ;;  %v2568_v11 = vld [vmem:[#allocation6 + $0x6c] sm:$0xf] }
  0x60   :  { %986 = vmatpush.bf16.msra.mxu1 %v835_v35  ;;  %v2150_v35 = vor.u32 %v2648_v24, %v2147_v26  ;;  %v1827_v12 = vld [vmem:[#allocation6 + $0x78] sm:$0xf0]  ;;  %v1958_v15 = vor.u32 %v2600_v8, %v1955_v9  ;;  %v2564_v20 = vld [vmem:[#allocation6 + $0x4c] sm:$0xf]  ;;  %v2261_v9 = vld [vmem:[#allocation9 + $0x30] sm:$0xf] }
  0x61   :  { %926 = vmatmul.bf16.vlgmr.msrb.gmra.mxu1 %v3009_v58  ;;  %v2083_v14 = vld [vmem:[#allocation6 + $0x278] sm:$0xf0]  ;;  %v1830_v16 = vor.u32 %v2568_v11, %v1827_v12  ;;  %v2560_v28 = vld [vmem:[#allocation6 + $0x2c] sm:$0xf] }
  0x62   :  { %971 = vmatpush.bf16.msra.mxu0 %v2130_v41  ;;  %v2131_v41 = vld [vmem:[#allocation6 + $0x2d8] sm:$0xf0] }
  0x63   :  { %960 = vmatpush.bf16.msra.mxu3 %v1970_v40  ;;  %948 = vmatpush.bf16.msra.mxu2 %v1826_v44  ;;  %v1875_v40 = vld [vmem:[#allocation6 + $0xd8] sm:$0xf0]  ;;  %v2006_v44 = vor.u32 %v2612_v33, %v2003_v34  ;;  %v2285_v34 = vld [vmem:[#allocation9 + $0x60] sm:$0xf] }
  0x64   :  { %987 = vmatpush.bf16.msra.mxu1 %v2210_v48  ;;  %v1878_v45 = vor.u32 %v2580_v39, %v1875_v40  ;;  %v2134_v48 = vor.u32 %v2644_v38, %v2131_v41  ;;  %v1939_v18 = vld [vmem:[#allocation6 + $0x158] sm:$0xf0]  ;;  %v2588_v40 = vld [vmem:[#allocation6 + $0x10c] sm:$0xf] }
  0x65   :  { %v2067_v23 = vld [vmem:[#allocation6 + $0x258] sm:$0xf0]  ;;  %v2668_v41 = vld [vmem:[#allocation6 + $0x38c] sm:$0xf] }
  0x66   :  { %972 = vmatpush.bf16.msra.mxu0 %v2114_v53  ;;  %v2115_v53 = vld [vmem:[#allocation6 + $0x2b8] sm:$0xf0] }
  0x67   :  { %961 = vmatpush.bf16.msra.mxu3 %v1954_v52  ;;  %949 = vmatpush.bf16.msra.mxu2 %v1810_v56  ;;  %v1859_v52 = vld [vmem:[#allocation6 + $0xb8] sm:$0xf0]  ;;  %v1990_v56 = vor.u32 %v2608_v46, %v1987_v47  ;;  %v2277_v46 = vld [vmem:[#allocation9 + $0x50] sm:$0xf] }
  0x68   :  { %988 = vmatpush.bf16.msra.mxu1 %v2194_v62  ;;  %v1862_v57 = vor.u32 %v2576_v51, %v1859_v52  ;;  %v2118_v62 = vor.u32 %v2640_v50, %v2115_v53  ;;  %v1923_v26 = vld [vmem:[#allocation6 + $0x138] sm:$0xf0]  ;;  %v2556_v50 = vld [vmem:[#allocation6 + $0xc] sm:$0xf] }
  0x69   :  { %v2051_v38 = vld [vmem:[#allocation6 + $0x238] sm:$0xf0] }
  0x6a   :  { %973 = vmatpush.bf16.msra.mxu0 %v2098_v6  ;;  %v1974_v6 = vor.u32 %v2604_v60, %v1971_v61  ;;  %v2227_v42 = vld [vmem:[#allocation6 + $0x398] sm:$0x30]  ;;  %v2269_v61 = vld [vmem:[#allocation9 + $0x40] sm:$0xf] }
  0x6b   :  { %962 = vmatpush.bf16.msra.mxu3 %v1938_v4  ;;  %950 = vmatpush.bf16.msra.mxu2 %v1794_v10  ;;  %v2636_v4 = vld [vmem:[#allocation6 + $0x28c] sm:$0xf]  ;;  %v2682_v47 = vld [vmem:[#allocation9 + $0x54] sm:$0xf0]  ;;  %v2230_v53 = vor.u32 %v2668_v41, %v2227_v42  ;;  %v2279_v42 = vld [vmem:[#allocation9 + $0x58] sm:$0xf0] }
  0x6c   :  { %989 = vmatpush.bf16.msra.mxu1 %v2178_v13  ;;  %v2102_v10 = vor.u32 %v2636_v4, %v2099_v5  ;;  %v2632_v13 = vld [vmem:[#allocation6 + $0x26c] sm:$0xf]  ;;  %v1779_v51 = vld [vmem:[#allocation6 + $0x18] sm:$0xf0]  ;;  %v2349_v4 = vld [vmem:[#allocation9 + $0xe0] sm:$0xf] }
  0x6d   :  { %v2086_v19 = vor.u32 %v2632_v13, %v2083_v14  ;;  %v2035_v52 = vld [vmem:[#allocation6 + $0x218] sm:$0xf0]  ;;  %v1782_v60 = vor.u32 %v2556_v50, %v1779_v51  ;;  %v838_v2 = vand.u32 %v2230_v53, %v3001_v3  ;;  %v2700_v5 = vld [vmem:[#allocation9 + $0xe4] sm:$0xf0]  ;;  %v2677_v51 = vld [vmem:[#allocation9 + $0x34] sm:$0xf] }
  0x6e   :  { %974 = vmatpush.bf16.msra.mxu0 %v2082_v21  ;;  %v1811_v21 = vld [vmem:[#allocation6 + $0x58] sm:$0xf0]  ;;  %v2350_v11 = vor.u32 %v2700_v5, %v2349_v4  ;;  %v2660_v3 = vld [vmem:[#allocation6 + $0x34c] sm:$0xf]  ;;  %v2263_v53 = vld [vmem:[#allocation9 + $0x38] sm:$0xf0] }
  0x6f   :  { %963 = vmatpush.bf16.msra.mxu3 %v1922_v17  ;;  %951 = vmatpush.bf16.msra.mxu2 %v1778_v25  ;;  %v2596_v17 = vld [vmem:[#allocation6 + $0x14c] sm:$0xf]  ;;  %v1814_v27 = vor.u32 %v2564_v20, %v1811_v21  ;;  %v2702_v55 = vld [vmem:[#allocation9 + $0xf4] sm:$0xf0]  ;;  %v2245_v21 = vld [vmem:[#allocation9 + $0x10] sm:$0xf] }
  0x70   :  { %990 = vmatpush.bf16.msra.mxu1 %v2162_v29  ;;  %v1942_v24 = vor.u32 %v2596_v17, %v1939_v18  ;;  %v2592_v25 = vld [vmem:[#allocation6 + $0x12c] sm:$0xf]  ;;  %v2293_v29 = vld [vmem:[#allocation9 + $0x70] sm:$0xf]  ;;  %v2358_v1 = vor.u32 %v2702_v55, %v2357_v54  ;;  %v2195_v13 = vld [vmem:[#allocation6 + $0x358] sm:$0xf0] }
  0x71   :  { %v1926_v39 = vor.u32 %v2592_v25, %v1923_v26  ;;  %v2198_v17 = vor.u32 %v2660_v3, %v2195_v13  ;;  %v2656_v18 = vld [vmem:[#allocation6 + $0x32c] sm:$0xf]  ;;  %v2237_v25 = vld [vmem:[#allocation9] sm:$0xf]  ;;  %v2309_v54 = vld [vmem:[#allocation9 + $0x90] sm:$0xf] }
  0x72   :  { %975 = vmatpush.bf16.msra.mxu0 %v2066_v37  ;;  %952 = vmatmul.bf16.vlgmr.msra.gmra.mxu2 %v3011_v59  ;;  %v2624_v37 = vld [vmem:[#allocation6 + $0x22c] sm:$0xf]  ;;  %v2690_v55 = vld [vmem:[#allocation9 + $0x94] sm:$0xf0]  ;;  %v2301_v4 = vld [vmem:[#allocation9 + $0x80] sm:$0xf] }
  0x73   :  { %1009 = vmatpush.bf16.msrb.mxu2 %v2022_v30  ;;  %964 = vmatpush.bf16.msra.mxu3 %v1906_v32  ;;  %v2686_v30 = vld [vmem:[#allocation9 + $0x74] sm:$0xf0]  ;;  %v2672_v26 = vld [vmem:[#allocation9 + $0x4] sm:$0xf0]  ;;  %v2413_v3 = vld [vmem:[#allocation9 + $0x160] sm:$0xf] }
  0x74   :  { %996 = vmatpush.bf16.msrb.mxu1 %v1894_v31  ;;  %v2070_v31 = vor.u32 %v2628_v22, %v2067_v23  ;;  %v1795_v32 = vld [vmem:[#allocation6 + $0x38] sm:$0xf0]  ;;  %v2294_v33 = vor.u32 %v2686_v30, %v2293_v29  ;;  %v2238_v29 = vor.u32 %v2672_v26, %v2237_v25  ;;  %v2692_v50 = vld [vmem:[#allocation9 + $0xa4] sm:$0xf0]  ;;  %v2697_v25 = vld [vmem:[#allocation9 + $0xd4] sm:$0xf] }
  0x75   :  { %2233 = vmatmul.msk.bf16.vlgmr.msra.gmra.mxu1 %vm820_vm2, %v3004_v36  ;;  %v2163_v23 = vld [vmem:[#allocation6 + $0x318] sm:$0xf0]  ;;  %v2688_v5 = vld [vmem:[#allocation9 + $0x84] sm:$0xf0]  ;;  %v2343_v26 = vld [vmem:[#allocation9 + $0xd8] sm:$0xf0] }
  0x76   :  { %965 = vmatmul.bf16.vlgmr.msra.gmra.mxu3 %v3013_v0  ;;  %976 = vmatpush.bf16.msra.mxu0 %v2050_v49  ;;  %v2620_v49 = vld [vmem:[#allocation6 + $0x20c] sm:$0xf] }
  0x77   :  { %1022 = vmatpush.bf16.msrb.mxu3 %v2150_v35  ;;  %1010 = vmatpush.bf16.msrb.mxu2 %v2006_v44  ;;  %v2684_v35 = vld [vmem:[#allocation9 + $0x64] sm:$0xf0]  ;;  %v1798_v44 = vor.u32 %v2560_v28, %v1795_v32  ;;  %v2698_v32 = vld [vmem:[#allocation9 + $0xd4] sm:$0xf0] }
  0x78   :  { %997 = vmatpush.bf16.msrb.mxu1 %v1878_v45  ;;  %v2286_v43 = vor.u32 %v2684_v35, %v2285_v34  ;;  %v1907_v45 = vld [vmem:[#allocation6 + $0x118] sm:$0xf0]  ;;  %v2287_v35 = vld [vmem:[#allocation9 + $0x68] sm:$0xf0]  ;;  %v2716_v13 = vld [vmem:[#allocation9 + $0x164] sm:$0xf0] }
  0x7a   :  { %977 = vmatpush.bf16.msra.mxu0 %v2034_v63  ;;  %v2038_v63 = vor.u32 %v2620_v49, %v2035_v52  ;;  %v2317_v49 = vld [vmem:[#allocation9 + $0xa0] sm:$0xf] }
  0x7b   :  { %1023 = vmatpush.bf16.msrb.mxu3 %v2134_v48  ;;  %1011 = vmatpush.bf16.msrb.mxu2 %v1990_v56  ;;  %v2054_v48 = vor.u32 %v2624_v37, %v2051_v38  ;;  %v1910_v56 = vor.u32 %v2588_v40, %v1907_v45  ;;  %v2333_v38 = vld [vmem:[#allocation9 + $0xc0] sm:$0xf]  ;;  %v2681_v40 = vld [vmem:[#allocation9 + $0x54] sm:$0xf]  ;;  %v2694_v45 = vld [vmem:[#allocation9 + $0xb4] sm:$0xf0]  ;;  %v2318_v52 = vor.u32 %v2692_v50, %v2317_v49 }
  0x7c   :  { %998 = vmatpush.bf16.msrb.mxu1 %v1862_v57  ;;  %v2278_v57 = vor.u32 %v2682_v47, %v2277_v46  ;;  %v2679_v46 = vld [vmem:[#allocation9 + $0x44] sm:$0xf]  ;;  %v2271_v47 = vld [vmem:[#allocation9 + $0x48] sm:$0xf0] }
  0x7d   :  { %978 = vmatmul.bf16.vlgmr.msra.gmra.mxu0 %v3009_v58  ;;  %v2691_v49 = vld [vmem:[#allocation9 + $0xa4] sm:$0xf] }
  0x7e   :  { %1452 = vmatpush.bf16.msrb.mxu0 %v2294_v33  ;;  %v2683_v33 = vld [vmem:[#allocation9 + $0x64] sm:$0xf] }
  0x7f   :  { %1024 = vmatpush.bf16.msrb.mxu3 %v2118_v62  ;;  %1012 = vmatpush.bf16.msrb.mxu2 %v1974_v6  ;;  %v2680_v62 = vld [vmem:[#allocation9 + $0x44] sm:$0xf0]  ;;  %v2290_v37 = vor.u32 %v2683_v33, %v2287_v35  ;;  %v2335_v35 = vld [vmem:[#allocation9 + $0xc8] sm:$0xf0] }
  0x80   :  { %999 = vmatpush.bf16.msrb.mxu1 %v1846_v7  ;;  %v2664_v6 = vld [vmem:[#allocation6 + $0x36c] sm:$0xf]  ;;  %v2211_v7 = vld [vmem:[#allocation6 + $0x378] sm:$0xf0]  ;;  %v2270_v8 = vor.u32 %v2680_v62, %v2269_v61  ;;  %v2421_v61 = vld [vmem:[#allocation9 + $0x170] sm:$0xf]  ;;  %v2310_v62 = vor.u32 %v2690_v55, %v2309_v54 }
  0x81   :  { %v2214_v12 = vor.u32 %v2664_v6, %v2211_v7  ;;  %v2673_v6 = vld [vmem:[#allocation9 + $0x14] sm:$0xf]  ;;  %v2247_v7 = vld [vmem:[#allocation9 + $0x18] sm:$0xf0]  ;;  %v2373_v54 = vld [vmem:[#allocation9 + $0x110] sm:$0xf] }
  0x82   :  { %1453 = vmatpush.bf16.msrb.mxu0 %v2286_v43  ;;  %v2282_v43 = vor.u32 %v2681_v40, %v2279_v42  ;;  %v2706_v55 = vld [vmem:[#allocation9 + $0x114] sm:$0xf0] }
  0x83   :  { %1025 = vmatpush.bf16.msrb.mxu3 %v2102_v10  ;;  %1013 = vmatpush.bf16.msrb.mxu2 %v1958_v15  ;;  %v2678_v10 = vld [vmem:[#allocation9 + $0x34] sm:$0xf0]  ;;  %v2253_v15 = vld [vmem:[#allocation9 + $0x20] sm:$0xf] }
  0x84   :  { %1000 = vmatpush.bf16.msrb.mxu1 %v1830_v16  ;;  %v2262_v14 = vor.u32 %v2678_v10, %v2261_v9  ;;  %v2676_v16 = vld [vmem:[#allocation9 + $0x24] sm:$0xf0]  ;;  %v2359_v9 = vld [vmem:[#allocation9 + $0xf8] sm:$0xf0]  ;;  %v2302_v10 = vor.u32 %v2688_v5, %v2301_v4 }
  0x85   :  { %v2254_v20 = vor.u32 %v2676_v16, %v2253_v15  ;;  %v2414_v15 = vor.u32 %v2716_v13, %v2413_v3  ;;  %v2671_v16 = vld [vmem:[#allocation9 + $0x4] sm:$0xf]  ;;  %v2415_v13 = vld [vmem:[#allocation9 + $0x168] sm:$0xf0] }
  0x86   :  { %1454 = vmatpush.bf16.msrb.mxu0 %v2278_v57  ;;  %v2675_v57 = vld [vmem:[#allocation9 + $0x24] sm:$0xf] }
  0x87   :  { %1026 = vmatpush.bf16.msrb.mxu3 %v2086_v19  ;;  %1014 = vmatpush.bf16.msrb.mxu2 %v1942_v24  ;;  %v2179_v19 = vld [vmem:[#allocation6 + $0x338] sm:$0xf0]  ;;  %v2715_v3 = vld [vmem:[#allocation9 + $0x164] sm:$0xf] }
  0x88   :  { %1001 = vmatpush.bf16.msrb.mxu1 %v1814_v27  ;;  %v2182_v22 = vor.u32 %v2656_v18, %v2179_v19  ;;  %v2295_v27 = vld [vmem:[#allocation9 + $0x78] sm:$0xf0]  ;;  %v2699_v19 = vld [vmem:[#allocation9 + $0xe4] sm:$0xf] }
  0x8a   :  { %1455 = vmatpush.bf16.msrb.mxu0 %v2270_v8  ;;  %v2701_v8 = vld [vmem:[#allocation9 + $0xf4] sm:$0xf] }
  0x8b   :  { %1027 = vmatpush.bf16.msrb.mxu3 %v2070_v31  ;;  %1015 = vmatpush.bf16.msrb.mxu2 %v1926_v39  ;;  %v2341_v31 = vld [vmem:[#allocation9 + $0xd0] sm:$0xf]  ;;  %v2696_v39 = vld [vmem:[#allocation9 + $0xc4] sm:$0xf0] }
  0x8c   :  { %1002 = vmatpush.bf16.msrb.mxu1 %v1798_v44  ;;  %v2342_v34 = vor.u32 %v2698_v32, %v2341_v31  ;;  %v2334_v41 = vor.u32 %v2696_v39, %v2333_v38  ;;  %v2325_v44 = vld [vmem:[#allocation9 + $0xb0] sm:$0xf]  ;;  %v2712_v31 = vld [vmem:[#allocation9 + $0x144] sm:$0xf0]  ;;  %v2710_v39 = vld [vmem:[#allocation9 + $0x134] sm:$0xf0] }
  0x8d   :  { %v2389_v38 = vld [vmem:[#allocation9 + $0x130] sm:$0xf] }
  0x8e   :  { %1456 = vmatpush.bf16.msrb.mxu0 %v2262_v14  ;;  %v3035_v14 = vld [vmem:[#allocation8] sm:$0xf]  ;;  %v2390_v42 = vor.u32 %v2710_v39, %v2389_v38 }
  0x8f   :  { %1028 = vmatpush.bf16.msrb.mxu3 %v2054_v48  ;;  %1016 = vmatpush.bf16.msrb.mxu2 %v1910_v56  ;;  %v2274_v48 = vor.u32 %v2679_v46, %v2271_v47  ;;  %v2266_v56 = vor.u32 %v2677_v51, %v2263_v53  ;;  %v2381_v47 = vld [vmem:[#allocation9 + $0x120] sm:$0xf]  ;;  %v2319_v53 = vld [vmem:[#allocation9 + $0xa8] sm:$0xf0]  ;;  %v2391_v38 = vld [vmem:[#allocation9 + $0x138] sm:$0xf0] }
  0x90   :  { %1003 = vmatpush.bf16.msrb.mxu1 %v1782_v60  ;;  %v2255_v60 = vld [vmem:[#allocation9 + $0x28] sm:$0xf0] }
  0x92   :  { %1017 = vmatmul.bf16.vlgmr.msrb.gmra.mxu2 %v3013_v0  ;;  %v2674_v0 = vld [vmem:[#allocation9 + $0x14] sm:$0xf0]  ;;  %1457 = vmatpush.bf16.msrb.mxu0 %v2254_v20  ;;  %v2351_v20 = vld [vmem:[#allocation9 + $0xe8] sm:$0xf0] }
  0x93   :  { %1029 = vmatpush.bf16.msrb.mxu3 %v2038_v63  ;;  %1004 = vmatmul.bf16.vlgmr.msrb.gmra.mxu1 %v3011_v59  ;;  %v2652_v59 = vld [vmem:[#allocation6 + $0x30c] sm:$0xf]  ;;  %v2246_v24 = vor.u32 %v2674_v0, %v2245_v21  ;;  %v2718_v63 = vld [vmem:[#allocation9 + $0x174] sm:$0xf0]  ;;  %v2354_v21 = vor.u32 %v2699_v19, %v2351_v20  ;;  %v236_v0 = vperm.slane %v3035_v14, 0 }
  0x94   :  { %1465 = vmatpush.bf16.msra.mxu1 %v2358_v1  ;;  %v2166_v28 = vor.u32 %v2652_v59, %v2163_v23  ;;  %v2258_v1 = vor.u32 %v2675_v57, %v2255_v60  ;;  %v2714_v59 = vld [vmem:[#allocation9 + $0x154] sm:$0xf0]  ;;  %v2689_v60 = vld [vmem:[#allocation9 + $0x94] sm:$0xf]  ;;  %v2407_v20 = vld [vmem:[#allocation9 + $0x158] sm:$0xf0] }
  0x95   :  { %v2713_v19 = vld [vmem:[#allocation9 + $0x154] sm:$0xf] }
  0x96   :  { %1030 = vmatmul.bf16.vlgmr.msrb.gmra.mxu3 %v3009_v58  ;;  %v2685_v58 = vld [vmem:[#allocation9 + $0x74] sm:$0xf]  ;;  %1458 = vmatpush.bf16.msrb.mxu0 %v2246_v24 }
  0x97   :  { %1038 = vmatpush.bf16.msra.mxu3 %v838_v2  ;;  %v2298_v30 = vor.u32 %v2685_v58, %v2295_v27  ;;  %v2422_v2 = vor.u32 %v2718_v63, %v2421_v61  ;;  %v2346_v27 = vor.u32 %v2697_v25, %v2343_v26  ;;  %v2311_v61 = vld [vmem:[#allocation9 + $0x98] sm:$0xf0] }
  0x98   :  { %1466 = vmatpush.bf16.msra.mxu1 %v2350_v11  ;;  %v2250_v11 = vor.u32 %v2673_v6, %v2247_v7  ;;  %v2314_v5 = vor.u32 %v2689_v60, %v2311_v61  ;;  %v2717_v6 = vld [vmem:[#allocation9 + $0x174] sm:$0xf]  ;;  %v2423_v7 = vld [vmem:[#allocation9 + $0x178] sm:$0xf0]  ;;  %v2703_v60 = vld [vmem:[#allocation9 + $0x104] sm:$0xf] }
  0x99   :  { %1478 = vmatpush.bf16.msra.mxu2 %v2422_v2  ;;  %v2704_v2 = vld [vmem:[#allocation9 + $0x104] sm:$0xf0]  ;;  %v2367_v61 = vld [vmem:[#allocation9 + $0x108] sm:$0xf0] }
  0x9a   :  { %1459 = vmatpush.bf16.msrb.mxu0 %v2238_v29 }
  0x9b   :  { %1039 = vmatpush.bf16.msra.mxu3 %v2214_v12  ;;  %v2362_v12 = vor.u32 %v2701_v8, %v2359_v9  ;;  %v2687_v8 = vld [vmem:[#allocation9 + $0x84] sm:$0xf]  ;;  %v2303_v9 = vld [vmem:[#allocation9 + $0x88] sm:$0xf0] }
  0x9c   :  { %1467 = vmatpush.bf16.msra.mxu1 %v2342_v34  ;;  %v2695_v34 = vld [vmem:[#allocation9 + $0xc4] sm:$0xf] }
  0x9d   :  { %1479 = vmatpush.bf16.msra.mxu2 %v2414_v15  ;;  %v237_v15 = vperm.slane %v3035_v14, 1 }
  0x9e   :  { %1504 = vmatpush.bf16.msra.mxu0 %v2298_v30  ;;  %v2397_v30 = vld [vmem:[#allocation9 + $0x140] sm:$0xf] }
  0x9f   :  { %1040 = vmatpush.bf16.msra.mxu3 %v2198_v17  ;;  %v2239_v17 = vld [vmem:[#allocation9 + $0x8] sm:$0xf0]  ;;  %v2398_v32 = vor.u32 %v2712_v31, %v2397_v30  ;;  %v2477_v31 = vld [vmem:[#allocation9 + $0x1e0] sm:$0xf] }
  0xa0   :  { %1468 = vmatpush.bf16.msra.mxu1 %v2334_v41  ;;  %v2242_v18 = vor.u32 %v2671_v16, %v2239_v17  ;;  %v2418_v16 = vor.u32 %v2715_v3, %v2415_v13  ;;  %v2429_v13 = vld [vmem:[#allocation9 + $0x180] sm:$0xf] }
  0xa2   :  { %1505 = vmatpush.bf16.msra.mxu0 %v2290_v37  ;;  %v2338_v37 = vor.u32 %v2695_v34, %v2335_v35 }
  0xa3   :  { %1041 = vmatpush.bf16.msra.mxu3 %v2182_v22  ;;  %v2405_v22 = vld [vmem:[#allocation9 + $0x150] sm:$0xf] }
  0xa4   :  { %v2406_v24 = vor.u32 %v2714_v59, %v2405_v22  ;;  %v2485_v59 = vld [vmem:[#allocation9 + $0x1f0] sm:$0xf] }
  0xa6   :  { %1506 = vmatpush.bf16.msra.mxu0 %v2282_v43  ;;  %1480 = vmatpush.bf16.msra.mxu2 %v2406_v24 }
  0xa7   :  { %1042 = vmatpush.bf16.msra.mxu3 %v2166_v28 }
  0xaa   :  { %2234 = vmatmul.msk.bf16.vlgmr.msra.gmra.mxu3 %vm820_vm2, %v3004_v36  ;;  %v2326_v36 = vor.u32 %v2694_v45, %v2325_v44  ;;  %1507 = vmatpush.bf16.msra.mxu0 %v2274_v48  ;;  %v2693_v44 = vld [vmem:[#allocation9 + $0xb4] sm:$0xf]  ;;  %v2327_v45 = vld [vmem:[#allocation9 + $0xb8] sm:$0xf0]  ;;  %v2708_v48 = vld [vmem:[#allocation9 + $0x124] sm:$0xf0] }
  0xab   :  { %1481 = vmatpush.bf16.msra.mxu2 %v2398_v32  ;;  %v2732_v32 = vld [vmem:[#allocation9 + $0x1e4] sm:$0xf0] }
  0xac   :  { %1469 = vmatpush.bf16.msra.mxu1 %v2326_v36  ;;  %v2330_v36 = vor.u32 %v2693_v44, %v2327_v45  ;;  %v2478_v35 = vor.u32 %v2732_v32, %v2477_v31  ;;  %v2383_v45 = vld [vmem:[#allocation9 + $0x128] sm:$0xf0]  ;;  %v2727_v31 = vld [vmem:[#allocation9 + $0x1c4] sm:$0xf] }
  0xad   :  { %v2463_v32 = vld [vmem:[#allocation9 + $0x1c8] sm:$0xf0] }
  0xae   :  { %1508 = vmatpush.bf16.msra.mxu0 %v2266_v56  ;;  %v2322_v56 = vor.u32 %v2691_v49, %v2319_v53 }
  0xaf   :  { %1482 = vmatpush.bf16.msra.mxu2 %v2390_v42  ;;  %v2707_v42 = vld [vmem:[#allocation9 + $0x124] sm:$0xf] }
  0xb0   :  { %1470 = vmatpush.bf16.msra.mxu1 %v2318_v52  ;;  %v2382_v52 = vor.u32 %v2708_v48, %v2381_v47  ;;  %v2461_v47 = vld [vmem:[#allocation9 + $0x1c0] sm:$0xf]  ;;  %v2728_v48 = vld [vmem:[#allocation9 + $0x1c4] sm:$0xf0] }
  0xb1   :  { %v2462_v53 = vor.u32 %v2728_v48, %v2461_v47 }
  0xb2   :  { %1509 = vmatpush.bf16.msra.mxu0 %v2258_v1  ;;  %v2365_v1 = vld [vmem:[#allocation9 + $0x100] sm:$0xf] }
  0xb3   :  { %1483 = vmatpush.bf16.msra.mxu2 %v2382_v52  ;;  %v2375_v52 = vld [vmem:[#allocation9 + $0x118] sm:$0xf0] }
  0xb4   :  { %1471 = vmatpush.bf16.msra.mxu1 %v2310_v62  ;;  %v2374_v62 = vor.u32 %v2706_v55, %v2373_v54  ;;  %v2453_v55 = vld [vmem:[#allocation9 + $0x1b0] sm:$0xf] }
  0xb6   :  { %1510 = vmatpush.bf16.msra.mxu0 %v2250_v11  ;;  %v2426_v11 = vor.u32 %v2717_v6, %v2423_v7  ;;  %v2437_v6 = vld [vmem:[#allocation9 + $0x190] sm:$0xf]  ;;  %v2722_v7 = vld [vmem:[#allocation9 + $0x194] sm:$0xf0] }
  0xb7   :  { %1484 = vmatpush.bf16.msra.mxu2 %v2374_v62  ;;  %v2370_v62 = vor.u32 %v2703_v60, %v2367_v61 }
  0xb8   :  { %1472 = vmatpush.bf16.msra.mxu1 %v2302_v10  ;;  %v2366_v10 = vor.u32 %v2704_v2, %v2365_v1  ;;  %v2445_v1 = vld [vmem:[#allocation9 + $0x1a0] sm:$0xf]  ;;  %v2724_v2 = vld [vmem:[#allocation9 + $0x1a4] sm:$0xf0] }
  0xb9   :  { %v888_v23 = vpop.f32.mrf.mxu3 }
  0xba   :  { %1511 = vmatpush.bf16.msra.mxu0 %v2242_v18  ;;  %v849_v58 = vpop.f32.mrf.mxu0 }
  0xbb   :  { %v850_v28 = vadd.f32 %v849_v58, %v236_v0  ;;  %1485 = vmatpush.bf16.msra.mxu2 %v2366_v10  ;;  %v2410_v0 = vor.u32 %v2713_v19, %v2407_v20  ;;  %v2711_v58 = vld [vmem:[#allocation9 + $0x144] sm:$0xf]  ;;  %v2487_v19 = vld [vmem:[#allocation9 + $0x1f8] sm:$0xf0] }
  0xbc   :  { %1517 = vmatpush.bf16.msrb.mxu1 %v2362_v12  ;;  %v2306_v12 = vor.u32 %v2687_v8, %v2303_v9  ;;  %v2438_v9 = vor.u32 %v2722_v7, %v2437_v6 }
  0xbe   :  { %v862_v29 = vpop.f32.mrf.mxu1 }
  0xbf   :  { %v863_v33 = vadd.f32 %v862_v29, %v850_v28  ;;  %1530 = vmatpush.bf16.msrb.mxu2 %v2426_v11 }
  0xc0   :  { %1518 = vmatpush.bf16.msrb.mxu1 %v2354_v21 }
  0xc1   :  { %v875_v40 = vpop.f32.mrf.mxu2  ;;  %v890_v41 = vpop.f32.mrf.mxu3 }
  0xc2   :  { %v876_v43 = vadd.f32 %v875_v40, %v863_v33  ;;  %v851_v46 = vpop.f32.mrf.mxu0  ;;  %v2469_v40 = vld [vmem:[#allocation9 + $0x1d0] sm:$0xf]  ;;  %v2730_v41 = vld [vmem:[#allocation9 + $0x1d4] sm:$0xf0] }
  0xc3   :  { %1531 = vmatpush.bf16.msrb.mxu2 %v2418_v16  ;;  %v2470_v44 = vor.u32 %v2730_v41, %v2469_v40  ;;  %v2447_v40 = vld [vmem:[#allocation9 + $0x1a8] sm:$0xf0] }
  0xc4   :  { %1519 = vmatpush.bf16.msrb.mxu1 %v2346_v27  ;;  %v889_v50 = vadd.f32 %v888_v23, %v876_v43  ;;  %v2734_v23 = vld [vmem:[#allocation9 + $0x1f4] sm:$0xf0]  ;;  %v2399_v27 = vld [vmem:[#allocation9 + $0x148] sm:$0xf0] }
  0xc5   :  { %v2486_v26 = vor.u32 %v2734_v23, %v2485_v59  ;;  %v2402_v28 = vor.u32 %v2711_v58, %v2399_v27 }
  0xc6   :  { %v864_v51 = vpop.f32.mrf.mxu1  ;;  %v1054_v57 = vmax.f32 %v889_v50, 0.0 }
  0xc7   :  { %1532 = vmatpush.bf16.msrb.mxu2 %v2410_v0  ;;  %1491 = vmatpush.bf16.msrb.mxu3 %v2486_v26  ;;  %v2705_v51 = vld [vmem:[#allocation9 + $0x114] sm:$0xf]  ;;  %v2731_v0 = vld [vmem:[#allocation9 + $0x1e4] sm:$0xf] }
  0xc8   :  { %1520 = vmatpush.bf16.msrb.mxu1 %v2338_v37  ;;  %v1058_v63 = vpack.c.bf16 %v1054_v57, %v1054_v57  ;;  %v2709_v37 = vld [vmem:[#allocation9 + $0x134] sm:$0xf]  ;;  %v2378_v54 = vor.u32 %v2705_v51, %v2375_v52 }
  0xc9   :  { %v877_v4 = vpop.f32.mrf.mxu2  ;;  %v2394_v39 = vor.u32 %v2709_v37, %v2391_v38 }
  0xca   :  { %1460 = vmatmul.bf16.vlgmr.msrb.gmra.mxu0 %v1058_v63  ;;  %v2446_v4 = vor.u32 %v2724_v2, %v2445_v1 }
  0xcb   :  { %1533 = vmatpush.bf16.msrb.mxu2 %v2402_v28  ;;  %1492 = vmatpush.bf16.msrb.mxu3 %v2478_v35  ;;  %v2729_v28 = vld [vmem:[#allocation9 + $0x1d4] sm:$0xf]  ;;  %v2455_v35 = vld [vmem:[#allocation9 + $0x1b8] sm:$0xf0] }
  0xcc   :  { %1521 = vmatpush.bf16.msrb.mxu1 %v2330_v36  ;;  %v2386_v36 = vor.u32 %v2707_v42, %v2383_v45  ;;  %v2721_v42 = vld [vmem:[#allocation9 + $0x194] sm:$0xf] }
  0xcf   :  { %1534 = vmatpush.bf16.msrb.mxu2 %v2394_v39  ;;  %1493 = vmatpush.bf16.msrb.mxu3 %v2470_v44  ;;  %v2723_v39 = vld [vmem:[#allocation9 + $0x1a4] sm:$0xf] }
  0xd0   :  { %1522 = vmatpush.bf16.msrb.mxu1 %v2322_v56  ;;  %v2726_v56 = vld [vmem:[#allocation9 + $0x1b4] sm:$0xf0]  ;;  %v2450_v41 = vor.u32 %v2723_v39, %v2447_v40 }
  0xd1   :  { %v2454_v57 = vor.u32 %v2726_v56, %v2453_v55 }
  0xd3   :  { %1535 = vmatpush.bf16.msrb.mxu2 %v2386_v36  ;;  %1494 = vmatpush.bf16.msrb.mxu3 %v2462_v53  ;;  %v2431_v36 = vld [vmem:[#allocation9 + $0x188] sm:$0xf0] }
  0xd4   :  { %1523 = vmatpush.bf16.msrb.mxu1 %v2314_v5  ;;  %v238_v5 = vperm.slane %v3035_v14, 2 }
  0xd5   :  { %v940_v17 = vpop.f32.mrf.mxu2 }
  0xd7   :  { %1536 = vmatpush.bf16.msrb.mxu2 %v2378_v54  ;;  %1495 = vmatpush.bf16.msrb.mxu3 %v2454_v57 }
  0xd8   :  { %1524 = vmatpush.bf16.msrb.mxu1 %v2306_v12 }
  0xd9   :  { %v901_v18 = vpop.f32.mrf.mxu3 }
  0xda   :  { %v902_v21 = vadd.f32 %v901_v18, %v237_v15  ;;  %v914_v22 = vpop.f32.mrf.mxu0  ;;  %1512 = vmatmul.bf16.vlgmr.msra.gmra.mxu0 %v1058_v63  ;;  %v2720_v15 = vld [vmem:[#allocation9 + $0x184] sm:$0xf0]  ;;  %v2733_v18 = vld [vmem:[#allocation9 + $0x1f4] sm:$0xf] }
  0xdb   :  { %1537 = vmatpush.bf16.msrb.mxu2 %v2370_v62  ;;  %1496 = vmatpush.bf16.msrb.mxu3 %v2446_v4 }
  0xdc   :  { %v915_v24 = vadd.f32 %v914_v22, %v902_v21  ;;  %v2490_v21 = vor.u32 %v2733_v18, %v2487_v19  ;;  %v2479_v22 = vld [vmem:[#allocation9 + $0x1e8] sm:$0xf0]  ;;  %v2750_v18 = vld [vmem:[#allocation11 + $0x78] sm:$0xff]  ;;  %v2739_v19 = vld [vmem:[#allocation11 + $0x20] sm:$0xff] }
  0xdd   :  { %v942_v30 = vpop.f32.mrf.mxu2  ;;  %v2482_v23 = vor.u32 %v2731_v0, %v2479_v22  ;;  %v2737_v22 = vld [vmem:[#allocation11 + $0x10] sm:$0xff] }
  0xde   :  { %v927_v25 = vpop.f32.mrf.mxu1 }
  0xdf   :  { %v928_v29 = vadd.f32 %v927_v25, %v915_v24  ;;  %1497 = vmatpush.bf16.msrb.mxu3 %v2438_v9 }
  0xe1   :  { %v941_v33 = vadd.f32 %v940_v17, %v928_v29  ;;  %v903_v34 = vpop.f32.mrf.mxu3  ;;  %v2430_v17 = vor.u32 %v2720_v15, %v2429_v13  ;;  %v2471_v29 = vld [vmem:[#allocation9 + $0x1d8] sm:$0xf0]  ;;  %v2741_v15 = vld [vmem:[#allocation11 + $0x30] sm:$0xff] }
  0xe2   :  { %v916_v46 = vpop.f32.mrf.mxu0  ;;  %v2474_v30 = vor.u32 %v2729_v28, %v2471_v29  ;;  %v2725_v34 = vld [vmem:[#allocation9 + $0x1b4] sm:$0xf]  ;;  %v2744_v29 = vld [vmem:[#allocation11 + $0x48] sm:$0xff] }
  0xe3   :  { %v1055_v43 = vmax.f32 %v941_v33, 0.0  ;;  %1498 = vmatpush.bf16.msrb.mxu3 %v2430_v17  ;;  %v2466_v33 = vor.u32 %v2727_v31, %v2463_v32  ;;  %v2458_v37 = vor.u32 %v2725_v34, %v2455_v35  ;;  %v2719_v46 = vld [vmem:[#allocation9 + $0x184] sm:$0xf]  ;;  %v2740_v17 = vld [vmem:[#allocation11 + $0x28] sm:$0xff]  ;;  %v2745_v28 = vld [vmem:[#allocation11 + $0x50] sm:$0xff] }
  0xe4   :  { %v2743_v31 = vld [vmem:[#allocation11 + $0x40] sm:$0xff] }
  0xe5   :  { %v1059_v49 = vpack.c.bf16 %v1055_v43, %v1055_v43  ;;  %v2439_v43 = vld [vmem:[#allocation9 + $0x198] sm:$0xf0] }
  0xe6   :  { %v929_v50 = vpop.f32.mrf.mxu1  ;;  %v2442_v44 = vor.u32 %v2721_v42, %v2439_v43 }
  0xe7   :  { %1473 = vmatmul.bf16.vlgmr.msra.gmra.mxu1 %v1059_v49  ;;  %1543 = vmatpush.bf16.msra.mxu3 %v2490_v21  ;;  %v239_v50 = vperm.slane %v3035_v14, 3  ;;  %v1126_v14 = vld [vmem:[%s3057_s4] sm:$0x3] }
  0xe8   :  { %v1128_v4 = vperm.slane %v1126_v14, 0  ;;  %1708 = vmatpush.bf16.msra.mxu1 %v2750_v18  ;;  %v2738_v21 = vld [vmem:[#allocation11 + $0x18] sm:$0xff] }
  0xeb   :  { %1544 = vmatpush.bf16.msra.mxu3 %v2482_v23  ;;  %v2748_v23 = vld [vmem:[#allocation11 + $0x68] sm:$0xff] }
  0xef   :  { %1545 = vmatpush.bf16.msra.mxu3 %v2474_v30 }
  0xf2   :  { %v992_v63 = vpop.f32.mrf.mxu1 }
  0xf3   :  { %1546 = vmatpush.bf16.msra.mxu3 %v2466_v33 }
  0xf5   :  { %v953_v8 = vpop.f32.mrf.mxu2 }
  0xf6   :  { %v954_v10 = vadd.f32 %v953_v8, %v238_v5 }
  0xf7   :  { %1525 = vmatmul.bf16.vlgmr.msrb.gmra.mxu1 %v1059_v49  ;;  %1547 = vmatpush.bf16.msra.mxu3 %v2458_v37  ;;  %v2434_v49 = vor.u32 %v2719_v46, %v2431_v36  ;;  %v2931_v46 = vmov 0  }
  0xf8   :  { %2765 = vset.pattern.permute.xlu0 %v2931_v46 }
  0xf9   :  { %v966_v11 = vpop.f32.mrf.mxu3 }
  0xfa   :  { %v994_v12 = vpop.f32.mrf.mxu1  ;;  %v967_v3 = vadd.f32 %v966_v11, %v954_v10  ;;  %v979_v16 = vpop.f32.mrf.mxu0  ;;  %v1129_v10 = vperm.slane %v1126_v14, 1 }
  0xfb   :  { %1548 = vmatpush.bf16.msra.mxu3 %v2450_v41 }
  0xfc   :  { %v980_v20 = vadd.f32 %v979_v16, %v967_v3  ;;  %v2742_v3 = vld [vmem:[#allocation11 + $0x38] sm:$0xff] }
  0xfd   :  { %v955_v24 = vpop.f32.mrf.mxu2  ;;  %1695 = vmatpush.bf16.msrb.mxu0 %v2742_v3 }
  0xfe   :  { %v993_v59 = vadd.f32 %v992_v63, %v980_v20  ;;  %v2749_v20 = vld [vmem:[#allocation11 + $0x70] sm:$0xff] }
  0xff   :  { %1549 = vmatpush.bf16.msra.mxu3 %v2442_v44  ;;  %1709 = vmatpush.bf16.msra.mxu1 %v2749_v20 }
 0x100   :  { %v1056_v25 = vmax.f32 %v993_v59, 0.0  ;;  %v2736_v59 = vld [vmem:[#allocation11 + $0x8] sm:$0xff] }
 0x101   :  { %v968_v26 = vpop.f32.mrf.mxu3  ;;  %1696 = vmatpush.bf16.msrb.mxu0 %v2741_v15 }
 0x102   :  { %v1060_v58 = vpack.c.bf16 %v1056_v25, %v1056_v25  ;;  %v981_v27 = vpop.f32.mrf.mxu0  ;;  %v2735_v25 = vld [vmem:[#allocation11] sm:$0xff] }
 0x103   :  { %1550 = vmatpush.bf16.msra.mxu3 %v2434_v49  ;;  %1710 = vmatpush.bf16.msra.mxu1 %v2748_v23  ;;  %v2747_v26 = vld [vmem:[#allocation11 + $0x60] sm:$0xff] }
 0x104   :  { %1486 = vmatmul.bf16.vlgmr.msra.gmra.mxu2 %v1060_v58 }
 0x105   :  { %1697 = vmatpush.bf16.msrb.mxu0 %v2740_v17 }
 0x107   :  { %1711 = vmatpush.bf16.msra.mxu1 %v2747_v26 }
 0x109   :  { %1698 = vmatpush.bf16.msrb.mxu0 %v2739_v19 }
 0x10d   :  { %1699 = vmatpush.bf16.msrb.mxu0 %v2738_v21 }
 0x110   :  { %v1005_v38 = vpop.f32.mrf.mxu1 }
 0x111   :  { %v1006_v52 = vadd.f32 %v1005_v38, %v239_v50  ;;  %1700 = vmatpush.bf16.msrb.mxu0 %v2737_v22 }
 0x114   :  { %1538 = vmatmul.bf16.vlgmr.msrb.gmra.mxu2 %v1060_v58  ;;  %v2746_v58 = vld [vmem:[#allocation11 + $0x58] sm:$0xff] }
 0x115   :  { %v1018_v45 = vpop.f32.mrf.mxu2  ;;  %1701 = vmatpush.bf16.msrb.mxu0 %v2736_v59  ;;  %1712 = vmatpush.bf16.msra.mxu1 %v2746_v58 }
 0x116   :  { %v1019_v54 = vadd.f32 %v1018_v45, %v1006_v52  ;;  %v1726_v45 = vld [vmem:[#allocation2] sm:$0x1] }
 0x117   :  { %1729 = vperm.xlu0 %2765, %v1726_v45  }
 0x118   :  { %v1007_v48 = vpop.f32.mrf.mxu1 }
 0x119   :  { %v1031_v47 = vpop.f32.mrf.mxu3  ;;  %1702 = vmatpush.bf16.msrb.mxu0 %v2735_v25  ;;  %1713 = vmatpush.bf16.msra.mxu1 %v2745_v28  ;;  %v2766_v48 = vld [vmem:[%s3059_s6] ss:$0 sm:$0xff]  ;;  %s1755_s6 = sshll.u32 %s3062_s9, 4  ;;  %s1756_s6 = int_to_ptr.hbm [resolvable:$true] %s1755_s6 }
 0x11a   :  { %v1032_v55 = vadd.f32 %v1031_v47, %v1019_v54 }
 0x11d   :  { %v1020_v51 = vpop.f32.mrf.mxu2  ;;  %1714 = vmatpush.bf16.msra.mxu1 %v2744_v29 }
 0x121   :  { %v1033_v53 = vpop.f32.mrf.mxu3  ;;  %1715 = vmatpush.bf16.msra.mxu1 %v2743_v31 }
 0x12d   :  { %v1044_v56 = vpop.f32.mrf.mxu3 }
 0x12e   :  { %v1045_v57 = vadd.f32 %v1044_v56, %v1032_v55  ;;  %v1725_v55 = vld [vmem:[%s3060_s7] sm:$0x1] }
 0x130   :  { %v1057_v60 = vmax.f32 %v1045_v57, 0.0 }
 0x132   :  { %v1061_v61 = vpack.c.bf16 %v1057_v60, %v1057_v60 }
 0x134   :  { %1499 = vmatmul.bf16.vlgmr.msrb.gmra.mxu3 %v1061_v61 }
 0x135   :  { %v1046_v62 = vpop.f32.mrf.mxu3 }
 0x144   :  { %1551 = vmatmul.bf16.vlgmr.msra.gmra.mxu3 %v1061_v61 }
 0x147   :  { %v1461_v63 = vpop.f32.mrf.mxu0 }
 0x148   :  { %v1462_v5 = vadd.f32 %v1461_v63, %v1128_v4 }
 0x14f   :  { %v1463_v1 = vpop.f32.mrf.mxu0 }
 0x157   :  { %v1513_v2 = vpop.f32.mrf.mxu0 }
 0x158   :  { %v1514_v11 = vadd.f32 %v1513_v2, %v1129_v10 }
 0x15f   :  { %v1515_v6 = vpop.f32.mrf.mxu0 }
 0x164   :  { %v1474_v7 = vpop.f32.mrf.mxu1 }
 0x165   :  { %v1475_v8 = vadd.f32 %v1474_v7, %v1462_v5 }
 0x16c   :  { %v1476_v9 = vpop.f32.mrf.mxu1 }
 0x174   :  { %v1526_v12 = vpop.f32.mrf.mxu1 }
 0x175   :  { %v1527_v13 = vadd.f32 %v1526_v12, %v1514_v11 }
 0x17c   :  { %v1528_v16 = vpop.f32.mrf.mxu1 }
 0x187   :  { %v1487_v0 = vpop.f32.mrf.mxu2 }
 0x188   :  { %v1488_v32 = vadd.f32 %v1487_v0, %v1475_v8 }
 0x189   :  { %v1730_v56 = vpop.permute.xlu0 %1729 }
 0x18a   :  { %v1732_v57 = vperm.slane %v1730_v56, 0 }
 0x18f   :  { %v1489_v24 = vpop.f32.mrf.mxu2 }
 0x197   :  { %v1539_v27 = vpop.f32.mrf.mxu2 }
 0x198   :  { %v1540_v39 = vadd.f32 %v1539_v27, %v1527_v13 }
 0x19f   :  { %v1541_v30 = vpop.f32.mrf.mxu2 }
 0x1b7   :  { %v1500_v33 = vpop.f32.mrf.mxu3 }
 0x1b8   :  { %v1501_v34 = vadd.f32 %v1500_v33, %v1488_v32 }
 0x1ba   :  { %v1559_v35 = vmax.f32 %v1501_v34, 0.0 }
 0x1bc   :  { %v1561_v37 = vpack.c.bf16 %v1559_v35, %v1559_v35 }
 0x1be   :  { %1703 = vmatmul.bf16.vlgmr.msrb.gmra.mxu0 %v1561_v37 }
 0x1bf   :  { %v1502_v38 = vpop.f32.mrf.mxu3 }
 0x1c7   :  { %v1552_v40 = vpop.f32.mrf.mxu3 }
 0x1c8   :  { %v1553_v41 = vadd.f32 %v1552_v40, %v1540_v39 }
 0x1ca   :  { %v1560_v42 = vmax.f32 %v1553_v41, 0.0 }
 0x1cc   :  { %v1562_v43 = vpack.c.bf16 %v1560_v42, %v1560_v42 }
 0x1ce   :  { %1716 = vmatmul.bf16.vlgmr.msra.gmra.mxu1 %v1562_v43 }
 0x1cf   :  { %v1554_v44 = vpop.f32.mrf.mxu3 }
 0x23b   :  { %v1704_v36 = vpop.f32.mrf.mxu0 }
 0x23c   :  { %v1705_v49 = vadd.f32 %v2766_v48, %v1704_v36 }
 0x243   :  { %v1706_v47 = vpop.f32.mrf.mxu0 }
 0x24b   :  { %v1717_v50 = vpop.f32.mrf.mxu1 }
 0x24c   :  { %v1718_v51 = vadd.f32 %v1717_v50, %v1705_v49 }
 0x24e   :  { %v1723_v52 = vmax.f32 %v1718_v51, 0.0 }
 0x250   :  { %v1724_v53 = vpack.c.bf16 %v1723_v52, %v1723_v52 }
 0x252   :  { %1740 = vmatpush.bf16.xpose.msra.mxu2 %v1724_v53 }
 0x253   :  { %v1719_v54 = vpop.f32.mrf.mxu1 }
 0x259   :  { %1741 = vmatmul.bf16.vlgmr.msra.gmra.mxu2 %v1725_v55 }
 0x2dc   :  { %v1742_v60 = vpop.f32.mrf.mxu2 }
 0x2dd   :  { %v1743_v61 = vadd.f32 %v1742_v60, %v1732_v57 }
 0x2df   :  { %1747 = vst.msk [vmem:[#allocation12] sm:$0x1] %vm1746_vm3, %v1743_v61 }
 0x2e0   :  { %1758 = dma.vmem_to_hbm [thread:$0]  %s1754_s8, 16, %s1756_s6, [#allocation5]  }
 0x2e4   :  { %v1744_v62 = vpop.f32.mrf.mxu2 }
 0x2e5   :  { %2917 = dma.done.wait [#allocation5], 16  }
 0x2e6   :  { %2918 = vsyncadd [#allocation5], 4294967280 }
 0x2e7   :  { %1763 = vsyncpa [#allocation4], 1 }
 0x2e8   :  { %1764 = vsyncpa [#allocation7], 1 }
 0x2e9   :  { %1765 = vsyncpa [#allocation10], 1 }
 0x2ea   :  { %1766 = vsyncpa [#allocation5], 1 }

</bundles_post_ra>
